<compile_context>
chip_gen: v7x
topology: tpu7x:2x2x1
jax: 0.10.0
libtpu: 0.0.40
codegen_flags: <defaults>
</compile_context>

<pallas_src>
import functools

import jax
import jax.numpy as jnp
from jax import lax
from jax.experimental import pallas as pl
from jax.experimental.pallas import tpu as pltpu


# ----------------------------------------------------------------------------
# Kernel: fused (row-gather + col-gather + add) for one block of `tm` tokens.
# ----------------------------------------------------------------------------
def _lightrnn_embed_kernel(row_ids_ref, col_ids_ref, tab_ref, out_ref, *,
                           table_size, n_splits):
    # row_ids_ref / col_ids_ref : (TM, 1) int32            -- this block's ids
    # tab_ref                   : (2*n_splits*TS, Dp) bf16 -- stacked limb
    #                             tables [R_hi;R_mid;R_lo;C_hi;C_mid;C_lo]
    # out_ref                   : (TM, Dp)
    tm = out_ref.shape[0]
    ts = table_size

    rid = row_ids_ref[...]                                   # (TM, 1)
    cid = col_ids_ref[...]                                   # (TM, 1)
    lane = lax.broadcasted_iota(jnp.int32, (tm, ts), 1)      # (TM, TS)

    oh_r = (lane == rid).astype(tab_ref.dtype)               # (TM, TS) bf16
    oh_c = (lane == cid).astype(tab_ref.dtype)

    # One fused one-hot with n_splits ones per table; ordering matches tab_ref.
    one_hot = jnp.concatenate([oh_r] * n_splits + [oh_c] * n_splits, axis=1)

    # Single DEFAULT-precision bf16 MXU pass with f32 accumulation.  The f32
    # accumulator re-sums the bf16 limbs of each table row, so the gathered
    # rows (and the row+col add) come out at full f32 accuracy (~1 ulp).
    dn = (((1,), (0,)), ((), ()))
    acc = lax.dot_general(one_hot, tab_ref[...], dn,
                          preferred_element_type=jnp.float32)
    out_ref[...] = acc.astype(out_ref.dtype)


# ----------------------------------------------------------------------------
# Wrapper
# ----------------------------------------------------------------------------
def _split_bf16_limbs(x_f32, n_splits):
    """Error-free split of an f32 array into `n_splits` bf16 limbs.

    sum(limbs) == x exactly (up to the final f32 re-summation rounding) for
    n_splits=3; n_splits=1 is a plain bf16 cast.
    """
    limbs = []
    resid = x_f32.astype(jnp.float32)
    for _ in range(n_splits):
        limb = resid.astype(jnp.bfloat16)
        limbs.append(limb)
        resid = resid - limb.astype(jnp.float32)   # exact in f32
    return limbs


def lightrnn_embedding(row_ids, col_ids, row_table, col_table, *,
                       tm=256, n_splits=3, out_dtype=None):
    """x[n] = row_table[row_ids[n]] + col_table[col_ids[n]] (fused Pallas kernel).

    row_ids / col_ids: any integer shape (...,); returns (..., D) in
    `out_dtype` (defaults to the table dtype, i.e. f32 like the PyTorch
    module; pass jnp.bfloat16 if the consumer runs in bf16 to halve the HBM
    writeback).
    tm:       tokens per grid step (multiple of 8; 256 fills the v6e/v7x MXU).
    n_splits: bf16 limbs per f32 table (3 = exact f32, 1 = bf16-table variant).
    """
    if out_dtype is None:
        out_dtype = row_table.dtype
    orig_shape = row_ids.shape
    rid = row_ids.reshape(-1).astype(jnp.int32)
    cid = col_ids.reshape(-1).astype(jnp.int32)
    n = rid.shape[0]
    ts, d = row_table.shape

    # Lane-dense layout: pad n_embd up to a multiple of 128 so every output
    # store is a full, unmasked vst (biggest single lever for mem-bound
    # kernels). No-op when D is already a multiple of 128 (the realistic case).
    d_pad = max(128, ((d + 127) // 128) * 128)
    row_f32 = row_table.astype(jnp.float32)
    col_f32 = col_table.astype(jnp.float32)
    if d_pad != d:
        pad = ((0, 0), (0, d_pad - d))
        row_f32 = jnp.pad(row_f32, pad)
        col_f32 = jnp.pad(col_f32, pad)

    # Stacked limb tables: (2*n_splits*TS, Dp) bf16, K-axis order matches the
    # one-hot built in the kernel.
    stacked = jnp.concatenate(
        _split_bf16_limbs(row_f32, n_splits) +
        _split_bf16_limbs(col_f32, n_splits), axis=0)
    k_tot = 2 * n_splits * ts

    # Pad token count to a tile multiple (id 0 is always a valid row/col id).
    n_pad = (-n) % tm
    if n_pad:
        rid = jnp.concatenate([rid, jnp.zeros((n_pad,), jnp.int32)])
        cid = jnp.concatenate([cid, jnp.zeros((n_pad,), jnp.int32)])
    n_padded = n + n_pad
    rid = rid.reshape(n_padded, 1)
    cid = cid.reshape(n_padded, 1)

    out_itemsize = jnp.dtype(out_dtype).itemsize

    # Explicit VMEM budget: resident stacked table (2 pipeline buffers) +
    # double-buffered id and output blocks + one-hot/iota temporaries, with
    # headroom; clamped to [32 MiB, 64 MiB] so it is valid on v5e/v6e/v7x.
    est = (2 * k_tot * d_pad * 2                 # stacked table buffers (bf16)
           + 4 * tm * 128 * 4                    # id blocks (lane-padded i32)
           + 2 * tm * d_pad * out_itemsize       # output blocks
           + 3 * tm * k_tot * 4                  # iota / compare / one-hot temps
           + (4 << 20))                          # margin
    vmem_limit = int(min(max(est, 32 << 20), 64 << 20))

    cost = pl.CostEstimate(
        flops=2 * n_padded * k_tot * d_pad,
        transcendentals=0,
        bytes_accessed=(stacked.size * 2            # limb tables (bf16)
                        + 2 * n_padded * 4          # ids
                        + n_padded * d_pad * out_itemsize))

    kernel = functools.partial(_lightrnn_embed_kernel,
                               table_size=ts, n_splits=n_splits)

    out = pl.pallas_call(
        kernel,
        out_shape=jax.ShapeDtypeStruct((n_padded, d_pad), out_dtype),
        grid_spec=pltpu.PrefetchScalarGridSpec(
            num_scalar_prefetch=0,
            grid=(n_padded // tm,),
            in_specs=[
                pl.BlockSpec((tm, 1), lambda i: (i, 0)),        # row ids block
                pl.BlockSpec((tm, 1), lambda i: (i, 0)),        # col ids block
                # Constant index_map -> copied to VMEM once, resident for all
                # grid steps (no per-block re-fetch).
                pl.BlockSpec((k_tot, d_pad), lambda i: (0, 0)),
            ],
            out_specs=pl.BlockSpec((tm, d_pad), lambda i: (i, 0)),
        ),
        compiler_params=pltpu.CompilerParams(
            # Token blocks are independent -> shard across TCs on v7x.
            dimension_semantics=("parallel",),
            vmem_limit_bytes=vmem_limit),
        cost_estimate=cost,
    )(rid, cid, stacked)

    return out[:n, :d].reshape(*orig_shape, d)


# ----------------------------------------------------------------------------
# Module-level glue (codebook, parameters, forward)
# ----------------------------------------------------------------------------
class Codebook:
    def __init__(self, table_size):
        self.table_size = table_size

    def lookup(self, ids):
        return ids // self.table_size, ids % self.table_size


class LightRNNEmbeddingPallas:
    def __init__(self, codebook, n_embd, key):
        self.codebook = codebook
        self.table_size = codebook.table_size
        self.n_embd = n_embd
        k1, k2 = jax.random.split(key)
        # nn.Embedding(table_size, n_embd) with normal(0, 0.02) init, float32.
        self.row_embed = 0.02 * jax.random.normal(
            k1, (self.table_size, n_embd), jnp.float32)
        self.col_embed = 0.02 * jax.random.normal(
            k2, (self.table_size, n_embd), jnp.float32)

    def forward(self, token_ids):
        row_ids, col_ids = self.codebook.lookup(token_ids)
        return lightrnn_embedding(row_ids, col_ids,
                                  self.row_embed, self.col_embed)


# ----------------------------------------------------------------------------
# Pure-JAX reference (for correctness check)
# ----------------------------------------------------------------------------
def reference_embedding(module, token_ids):
    rid, cid = module.codebook.lookup(token_ids)
    return module.row_embed[rid] + module.col_embed[cid]


if __name__ == "__main__":
    B, T, D, TS = 2, 8, 32, 128          # batch, seq, n_embd, table_size
    key = jax.random.PRNGKey(0)
    k_param, k_tok = jax.random.split(key)

    codebook = Codebook(TS)
    emb = LightRNNEmbeddingPallas(codebook, D, k_param)

    token_ids = jax.random.randint(k_tok, (B, T), 0, TS * TS, jnp.int32)

    x = emb.forward(token_ids)
    x = jax.block_until_ready(x)
    assert x.shape == (B, T, D), x.shape
    assert x.dtype == jnp.float32, x.dtype

    x_ref = jax.block_until_ready(reference_embedding(emb, token_ids))
    assert jnp.allclose(x, x_ref, rtol=1e-5, atol=1e-6), (
        float(jnp.max(jnp.abs(x - x_ref))))

    print("KERNEL_OK")
</pallas_src>

<mosaic_0001>
module attributes {stable_mosaic.version = 11 : i64} {
  func.func @_lightrnn_embed_kernel(%arg0: i32, %arg1: memref<256x1xi32, #tpu.memory_space<vmem>>, %arg2: memref<256x1xi32, #tpu.memory_space<vmem>>, %arg3: memref<768x128xbf16, #tpu.memory_space<vmem>>, %arg4: memref<256x128xf32, #tpu.memory_space<vmem>>) attributes {dimension_semantics = [#tpu.dimension_semantics<parallel>], iteration_bounds = array<i64: 1>, scalar_prefetch = 0 : i64, scratch_operands = 0 : i64, tpu.core_type = #tpu.core_type<tc>, window_params = [{transform_indices = @transform_0, window_bounds = array<i64: 256, 1>}, {transform_indices = @transform_1, window_bounds = array<i64: 256, 1>}, {pipeline_mode = #tpu.pipeline_mode<synchronous>, transform_indices = @transform_2, window_bounds = array<i64: 768, 128>}, {transform_indices = @transform_3, window_bounds = array<i64: 256, 128>}]} {
    %c0 = arith.constant 0 : index
    %c0_0 = arith.constant 0 : index
    %0 = vector.load %arg1[%c0, %c0_0] : memref<256x1xi32, #tpu.memory_space<vmem>>, vector<256x1xi32>
    %c0_1 = arith.constant 0 : index
    %c0_2 = arith.constant 0 : index
    %1 = vector.load %arg2[%c0_1, %c0_2] : memref<256x1xi32, #tpu.memory_space<vmem>>, vector<256x1xi32>
    %2 = tpu.iota {dimensions = array<i32: 1>} : vector<256x128xi32>
    %3 = vector.broadcast %0 : vector<256x1xi32> to vector<256x128xi32>
    %4 = arith.cmpi eq, %2, %3 : vector<256x128xi32>
    %5 = arith.extui %4 : vector<256x128xi1> to vector<256x128xi32>
    %6 = arith.sitofp %5 : vector<256x128xi32> to vector<256x128xf32>
    %7 = arith.truncf %6 : vector<256x128xf32> to vector<256x128xbf16>
    %8 = vector.broadcast %1 : vector<256x1xi32> to vector<256x128xi32>
    %9 = arith.cmpi eq, %2, %8 : vector<256x128xi32>
    %10 = arith.extui %9 : vector<256x128xi1> to vector<256x128xi32>
    %11 = arith.sitofp %10 : vector<256x128xi32> to vector<256x128xf32>
    %12 = arith.truncf %11 : vector<256x128xf32> to vector<256x128xbf16>
    %13 = tpu.concatenate %7, %7, %7, %12, %12, %12 in 1 : vector<256x128xbf16>, vector<256x128xbf16>, vector<256x128xbf16>, vector<256x128xbf16>, vector<256x128xbf16>, vector<256x128xbf16> -> vector<256x768xbf16>
    %c0_3 = arith.constant 0 : index
    %c0_4 = arith.constant 0 : index
    %14 = vector.load %arg3[%c0_3, %c0_4] : memref<768x128xbf16, #tpu.memory_space<vmem>>, vector<768x128xbf16>
    %cst = arith.constant dense<0.000000e+00> : vector<256x128xf32>
    %15 = tpu.matmul %13, %14, %cst {dimension_numbers = #tpu.dot_dimension_numbers<[1], [0], [0], [1], [0, 0, 1, 1], [], []>} : vector<256x768xbf16>, vector<768x128xbf16>, vector<256x128xf32> -> vector<256x128xf32>
    %c0_5 = arith.constant 0 : index
    %c0_6 = arith.constant 0 : index
    %16 = vector.load %arg4[%c0_5, %c0_6] : memref<256x128xf32, #tpu.memory_space<vmem>>, vector<256x128xf32>
    tpu.vector_store %arg4[%c0_5, %c0_6], %15 {strides = array<i32>} : memref<256x128xf32, #tpu.memory_space<vmem>>, vector<256x128xf32>,
    return
  }
  func.func @transform_0(%arg0: i32) -> (i32, i32) {
    %c0_i32 = arith.constant 0 : i32
    %c0_i32_0 = arith.constant 0 : i32
    return %arg0, %c0_i32 : i32, i32
  }
  func.func @transform_1(%arg0: i32) -> (i32, i32) {
    %c0_i32 = arith.constant 0 : i32
    %c0_i32_0 = arith.constant 0 : i32
    return %arg0, %c0_i32 : i32, i32
  }
  func.func @transform_2(%arg0: i32) -> (i32, i32) {
    %c0_i32 = arith.constant 0 : i32
    %c0_i32_0 = arith.constant 0 : i32
    %c0_i32_1 = arith.constant 0 : i32
    return %c0_i32, %c0_i32_0 : i32, i32
  }
  func.func @transform_3(%arg0: i32) -> (i32, i32) {
    %c0_i32 = arith.constant 0 : i32
    %c0_i32_0 = arith.constant 0 : i32
    return %arg0, %c0_i32 : i32, i32
  }
}

</mosaic_0001>

<bundles_post_ra>
// kernel: tpu_custom_call.1
= control target key start
LH: loop header
LB: loop body
LE: loop exit
PB: predicated region body
PF: predicated region fallthrough
CT: control target
= control target key end

     0   :  { %v2148_v2 = vmov 0   ;;  %s2939_s0 = inlined_call_operand.vmem [shape: s32[256,1], index: 0, kind: input, shape index: {}]   ;;  %s2940_s1 = inlined_call_operand.vmem [shape: s32[256,1], index: 1, kind: input, shape index: {}]   ;;  %s2941_s2 = inlined_call_operand.vmem [shape: bf16[768,128], index: 2, kind: input, shape index: {}]   ;;  %s2942_s3 = inlined_call_operand.hbm [shape: f32[256,128], index: 3, kind: output, shape index: {}]  }
   0x1   :  { %v32_v0 = vld [vmem:[%s2939_s0 + $0x80] sm:$0xff]  ;;  %2075 = vset.pattern.permute.xlu1 %v2148_v2  ;;  %2074 = vset.pattern.permute.xlu0 %v2148_v2  ;;  %v33_v3 = vld [vmem:[%s2939_s0 + $0x88] sm:$0xff]  ;;  %v34_v5 = vld [vmem:[%s2939_s0 + $0x90] sm:$0xff] }
   0x2   :  { %v16_v1 = vld [vmem:[%s2939_s0] sm:$0xff]  ;;  %131 = vperm.xlu0 %2074, %v32_v0   ;;  %v17_v4 = vld [vmem:[%s2939_s0 + $0x8] sm:$0xff]  ;;  %v35_v6 = vld [vmem:[%s2939_s0 + $0x98] sm:$0xff] }
   0x3   :  { %83 = vperm.xlu1 %2075, %v16_v1   ;;  %v18_v7 = vld [vmem:[%s2939_s0 + $0x10] sm:$0xff]  ;;  %v19_v8 = vld [vmem:[%s2939_s0 + $0x18] sm:$0xff]  ;;  %v36_v9 = vld [vmem:[%s2939_s0 + $0xa0] sm:$0xff] }
   0x4   :  { %v37_v10 = vld [vmem:[%s2939_s0 + $0xa8] sm:$0xff]  ;;  %v2076_v11 = vld [vmem:[%s2941_s2 + $0x40] sm:$0xff]   ;;  %v38_v17 = vld [vmem:[%s2939_s0 + $0xb0] sm:$0xff] }
   0x5   :  { %v20_v12 = vld [vmem:[%s2939_s0 + $0x20] sm:$0xff]  ;;  %v21_v13 = vld [vmem:[%s2939_s0 + $0x28] sm:$0xff]  ;;  %2053 = vmatprep.subr.bf16.mxu1 %v2076_v11  ;;  %1717 = vmatprep.subr.bf16.mxu0 %v2076_v11  ;;  %v39_v18 = vld [vmem:[%s2939_s0 + $0xb8] sm:$0xff] }
   0x6   :  { %134 = vperm.xlu0 %2074, %v33_v3   ;;  %v2077_v14 = vld [vmem:[%s2941_s2] sm:$0xff]   ;;  %v2078_v15 = vld [vmem:[%s2941_s2 + $0x48] sm:$0xff]   ;;  %v2080_v19 = vld [vmem:[%s2941_s2 + $0x50] sm:$0xff]  }
   0x7   :  { %86 = vperm.xlu1 %2075, %v17_v4   ;;  %2061 = vmatpush3.bf16.msra.mxu1 %v2077_v14  ;;  %v2079_v16 = vld [vmem:[%s2941_s2 + $0x8] sm:$0xff]   ;;  %v2081_v20 = vld [vmem:[%s2941_s2 + $0x10] sm:$0xff]   ;;  %v23_v22 = vld [vmem:[%s2939_s0 + $0x38] sm:$0xff] }
   0x8   :  { %1718 = vmatpush3.bf16.msra.mxu0 %v2077_v14  ;;  %2054 = vmatprep.subr.bf16.mxu1 %v2078_v15  ;;  %v22_v21 = vld [vmem:[%s2939_s0 + $0x30] sm:$0xff]  ;;  %v2082_v23 = vld [vmem:[%s2941_s2 + $0x58] sm:$0xff]   ;;  %v40_v25 = vld [vmem:[%s2939_s0 + $0xc0] sm:$0xff] }
   0x9   :  { %1719 = vmatprep.subr.bf16.mxu0 %v2078_v15  ;;  %v2083_v24 = vld [vmem:[%s2941_s2 + $0x18] sm:$0xff]   ;;  %v41_v26 = vld [vmem:[%s2939_s0 + $0xc8] sm:$0xff]  ;;  %v2084_v27 = vld [vmem:[%s2941_s2 + $0x60] sm:$0xff]  }
   0xa   :  { %137 = vperm.xlu0 %2074, %v34_v5   ;;  %v24_v28 = vld [vmem:[%s2939_s0 + $0x40] sm:$0xff]  ;;  %v25_v30 = vld [vmem:[%s2939_s0 + $0x48] sm:$0xff]  ;;  %v42_v32 = vld [vmem:[%s2939_s0 + $0xd0] sm:$0xff] }
   0xb   :  { %140 = vperm.xlu1 %2075, %v35_v6   ;;  %2062 = vmatpush3.bf16.msra.mxu1 %v2079_v16  ;;  %v2085_v29 = vld [vmem:[%s2941_s2 + $0x20] sm:$0xff]   ;;  %v2086_v31 = vld [vmem:[%s2941_s2 + $0x68] sm:$0xff]   ;;  %v43_v34 = vld [vmem:[%s2939_s0 + $0xd8] sm:$0xff] }
   0xc   :  { %1720 = vmatpush3.bf16.msra.mxu0 %v2079_v16  ;;  %2055 = vmatprep.subr.bf16.mxu1 %v2080_v19  ;;  %v2087_v33 = vld [vmem:[%s2941_s2 + $0x28] sm:$0xff]   ;;  %v2088_v35 = vld [vmem:[%s2941_s2 + $0x70] sm:$0xff]   ;;  %v27_v38 = vld [vmem:[%s2939_s0 + $0x58] sm:$0xff] }
   0xd   :  { %1721 = vmatprep.subr.bf16.mxu0 %v2080_v19  ;;  %v26_v36 = vld [vmem:[%s2939_s0 + $0x50] sm:$0xff]  ;;  %v2090_v39 = vld [vmem:[%s2941_s2 + $0x78] sm:$0xff]   ;;  %v44_v40 = vld [vmem:[%s2939_s0 + $0xe0] sm:$0xff] }
   0xe   :  { %89 = vperm.xlu0 %2074, %v18_v7   ;;  %v2089_v37 = vld [vmem:[%s2941_s2 + $0x30] sm:$0xff]   ;;  %v45_v41 = vld [vmem:[%s2939_s0 + $0xe8] sm:$0xff]  ;;  %v2091_v42 = vld [vmem:[%s2941_s2 + $0x38] sm:$0xff]  }
   0xf   :  { %92 = vperm.xlu1 %2075, %v19_v8   ;;  %2063 = vmatpush3.bf16.msra.mxu1 %v2081_v20  ;;  %v2092_v43 = vld [vmem:[%s2941_s2 + $0xc0] sm:$0xff]   ;;  %v29_v46 = vld [vmem:[%s2939_s0 + $0x68] sm:$0xff]  ;;  %v46_v47 = vld [vmem:[%s2939_s0 + $0xf0] sm:$0xff] }
  0x10   :  { %1722 = vmatpush3.bf16.msra.mxu0 %v2081_v20  ;;  %2056 = vmatprep.subr.bf16.mxu1 %v2082_v23  ;;  %v2094_v44 = vld [vmem:[%s2941_s2 + $0x140] sm:$0xff]   ;;  %v47_v48 = vld [vmem:[%s2939_s0 + $0xf8] sm:$0xff]  ;;  %v30_v49 = vld [vmem:[%s2939_s0 + $0x70] sm:$0xff] }
  0x11   :  { %1723 = vmatprep.subr.bf16.mxu0 %v2082_v23  ;;  %v28_v45 = vld [vmem:[%s2939_s0 + $0x60] sm:$0xff]  ;;  %v31_v50 = vld [vmem:[%s2939_s0 + $0x78] sm:$0xff]  ;;  %v49_v52 = vld [vmem:[%s2940_s1 + $0x8] sm:$0xff] }
  0x12   :  { %143 = vperm.xlu0 %2074, %v36_v9   ;;  %v48_v51 = vld [vmem:[%s2940_s1] sm:$0xff]  ;;  %v50_v53 = vld [vmem:[%s2940_s1 + $0x10] sm:$0xff]  ;;  %v51_v54 = vld [vmem:[%s2940_s1 + $0x18] sm:$0xff] }
  0x13   :  { %146 = vperm.xlu1 %2075, %v37_v10   ;;  %2064 = vmatpush3.bf16.msra.mxu1 %v2083_v24 }
  0x14   :  { %1724 = vmatpush3.bf16.msra.mxu0 %v2083_v24  ;;  %2057 = vmatprep.subr.bf16.mxu1 %v2084_v27 }
  0x15   :  { %1725 = vmatprep.subr.bf16.mxu0 %v2084_v27 }
  0x16   :  { %95 = vperm.xlu0 %2074, %v20_v12  }
  0x17   :  { %98 = vperm.xlu1 %2075, %v21_v13   ;;  %2065 = vmatpush3.bf16.msra.mxu1 %v2085_v29 }
  0x18   :  { %1726 = vmatpush3.bf16.msra.mxu0 %v2085_v29  ;;  %2058 = vmatprep.subr.bf16.mxu1 %v2086_v31 }
  0x19   :  { %1727 = vmatprep.subr.bf16.mxu0 %v2086_v31 }
  0x1a   :  { %149 = vperm.xlu0 %2074, %v38_v17  }
  0x1b   :  { %152 = vperm.xlu1 %2075, %v39_v18   ;;  %2066 = vmatpush3.bf16.msra.mxu1 %v2087_v33 }
  0x1c   :  { %1728 = vmatpush3.bf16.msra.mxu0 %v2087_v33  ;;  %2059 = vmatprep.subr.bf16.mxu1 %v2088_v35 }
  0x1d   :  { %1729 = vmatprep.subr.bf16.mxu0 %v2088_v35 }
  0x1e   :  { %101 = vperm.xlu0 %2074, %v22_v21  }
  0x1f   :  { %104 = vperm.xlu1 %2075, %v23_v22   ;;  %2067 = vmatpush3.bf16.msra.mxu1 %v2089_v37 }
  0x20   :  { %1730 = vmatpush3.bf16.msra.mxu0 %v2089_v37  ;;  %2060 = vmatprep.subr.bf16.mxu1 %v2090_v39 }
  0x21   :  { %1731 = vmatprep.subr.bf16.mxu0 %v2090_v39 }
  0x22   :  { %155 = vperm.xlu0 %2074, %v40_v25  }
  0x23   :  { %158 = vperm.xlu1 %2075, %v41_v26   ;;  %2068 = vmatpush3.bf16.msra.mxu1 %v2091_v42 }
  0x24   :  { %1732 = vmatpush3.bf16.msra.mxu0 %v2091_v42  ;;  %1829 = vmatprep.subr.bf16.mxu1 %v2092_v43 }
  0x25   :  { %1941 = vmatprep.subr.bf16.mxu0 %v2094_v44 }
  0x26   :  { %107 = vperm.xlu0 %2074, %v24_v28  }
  0x27   :  { %110 = vperm.xlu1 %2075, %v25_v30  }
  0x2a   :  { %161 = vperm.xlu0 %2074, %v42_v32  }
  0x2b   :  { %164 = vperm.xlu1 %2075, %v43_v34  }
  0x2e   :  { %113 = vperm.xlu0 %2074, %v26_v36  }
  0x2f   :  { %116 = vperm.xlu1 %2075, %v27_v38  }
  0x32   :  { %167 = vperm.xlu0 %2074, %v44_v40  }
  0x33   :  { %170 = vperm.xlu1 %2075, %v45_v41  }
  0x36   :  { %119 = vperm.xlu0 %2074, %v28_v45  }
  0x37   :  { %122 = vperm.xlu1 %2075, %v29_v46  }
  0x3a   :  { %173 = vperm.xlu0 %2074, %v46_v47  }
  0x3b   :  { %176 = vperm.xlu1 %2075, %v47_v48  }
  0x3e   :  { %125 = vperm.xlu0 %2074, %v30_v49  }
  0x3f   :  { %128 = vperm.xlu1 %2075, %v31_v50  }
  0x42   :  { %291 = vperm.xlu0 %2074, %v48_v51  }
  0x43   :  { %294 = vperm.xlu1 %2075, %v49_v52  }
  0x44   :  { %8 = vsyncpa [#allocation3], 0  ;;  %v52_v55 = vld [vmem:[%s2940_s1 + $0x20] sm:$0xff]  ;;  %v53_v56 = vld [vmem:[%s2940_s1 + $0x28] sm:$0xff]  ;;  %v80_v19 = vlaneseq  ;;  %v2149_v30 = vmov 1.0|1.0  }
  0x45   :  { %v54_v57 = vld [vmem:[%s2940_s1 + $0x30] sm:$0xff]  ;;  %v55_v58 = vld [vmem:[%s2940_s1 + $0x38] sm:$0xff]  ;;  %v56_v59 = vld [vmem:[%s2940_s1 + $0x40] sm:$0xff]  ;;  %v2954_v35 = vmov 0  ;;  %v2958_v49 = vmov 0 }
  0x46   :  { %297 = vperm.xlu0 %2074, %v50_v53   ;;  %v57_v60 = vld [vmem:[%s2940_s1 + $0x48] sm:$0xff]  ;;  %v58_v61 = vld [vmem:[%s2940_s1 + $0x50] sm:$0xff]  ;;  %v59_v62 = vld [vmem:[%s2940_s1 + $0x58] sm:$0xff]  ;;  %v2419_v22 = vand.u32 127, %v80_v19 }
  0x47   :  { %300 = vperm.xlu1 %2075, %v51_v54   ;;  %v60_v63 = vld [vmem:[%s2940_s1 + $0x60] sm:$0xff]  ;;  %v61_v0 = vld [vmem:[%s2940_s1 + $0x68] sm:$0xff]  ;;  %v62_v1 = vld [vmem:[%s2940_s1 + $0x70] sm:$0xff] }
  0x48   :  { %v63_v2 = vld [vmem:[%s2940_s1 + $0x78] sm:$0xff]  ;;  %v64_v3 = vld [vmem:[%s2940_s1 + $0x80] sm:$0xff]  ;;  %v65_v4 = vld [vmem:[%s2940_s1 + $0x88] sm:$0xff] }
  0x49   :  { %v66_v5 = vld [vmem:[%s2940_s1 + $0x90] sm:$0xff]  ;;  %v67_v6 = vld [vmem:[%s2940_s1 + $0x98] sm:$0xff]  ;;  %v68_v7 = vld [vmem:[%s2940_s1 + $0xa0] sm:$0xff] }
  0x4a   :  { %303 = vperm.xlu0 %2074, %v52_v55   ;;  %v69_v8 = vld [vmem:[%s2940_s1 + $0xa8] sm:$0xff]  ;;  %v70_v9 = vld [vmem:[%s2940_s1 + $0xb0] sm:$0xff]  ;;  %v71_v10 = vld [vmem:[%s2940_s1 + $0xb8] sm:$0xff] }
  0x4b   :  { %306 = vperm.xlu1 %2075, %v53_v56   ;;  %v72_v11 = vld [vmem:[%s2940_s1 + $0xc0] sm:$0xff]  ;;  %v73_v12 = vld [vmem:[%s2940_s1 + $0xc8] sm:$0xff]  ;;  %v74_v13 = vld [vmem:[%s2940_s1 + $0xd0] sm:$0xff] }
  0x4c   :  { %v75_v14 = vld [vmem:[%s2940_s1 + $0xd8] sm:$0xff]  ;;  %v76_v15 = vld [vmem:[%s2940_s1 + $0xe0] sm:$0xff]  ;;  %v77_v16 = vld [vmem:[%s2940_s1 + $0xe8] sm:$0xff] }
  0x4d   :  { %v78_v17 = vld [vmem:[%s2940_s1 + $0xf0] sm:$0xff]  ;;  %v79_v18 = vld [vmem:[%s2940_s1 + $0xf8] sm:$0xff]  ;;  %v2093_v25 = vld [vmem:[%s2941_s2 + $0x80] sm:$0xff]  }
  0x4e   :  { %309 = vperm.xlu0 %2074, %v54_v57   ;;  %v2095_v27 = vld [vmem:[%s2941_s2 + $0x100] sm:$0xff]   ;;  %v2096_v28 = vld [vmem:[%s2941_s2 + $0xc8] sm:$0xff]   ;;  %v2100_v37 = vld [vmem:[%s2941_s2 + $0xd0] sm:$0xff]  }
  0x4f   :  { %312 = vperm.xlu1 %2075, %v55_v58   ;;  %v2098_v31 = vld [vmem:[%s2941_s2 + $0x148] sm:$0xff]   ;;  %v2102_v38 = vld [vmem:[%s2941_s2 + $0x150] sm:$0xff]   ;;  %v2104_v44 = vld [vmem:[%s2941_s2 + $0xd8] sm:$0xff]  }
  0x50   :  { %v2097_v34 = vld [vmem:[%s2941_s2 + $0x88] sm:$0xff]   ;;  %v2101_v41 = vld [vmem:[%s2941_s2 + $0x90] sm:$0xff]   ;;  %v2106_v45 = vld [vmem:[%s2941_s2 + $0x158] sm:$0xff]  }
  0x51   :  { %v2099_v36 = vld [vmem:[%s2941_s2 + $0x108] sm:$0xff]   ;;  %v2103_v43 = vld [vmem:[%s2941_s2 + $0x110] sm:$0xff]   ;;  %v2105_v48 = vld [vmem:[%s2941_s2 + $0x98] sm:$0xff]  }
  0x52   :  { %315 = vperm.xlu0 %2074, %v56_v59   ;;  %v2107_v50 = vld [vmem:[%s2941_s2 + $0x118] sm:$0xff]   ;;  %v2108_v51 = vld [vmem:[%s2941_s2 + $0xe0] sm:$0xff]   ;;  %v2112_v58 = vld [vmem:[%s2941_s2 + $0xe8] sm:$0xff]  }
  0x53   :  { %318 = vperm.xlu1 %2075, %v57_v60   ;;  %v2110_v52 = vld [vmem:[%s2941_s2 + $0x160] sm:$0xff]   ;;  %v2114_v59 = vld [vmem:[%s2941_s2 + $0x168] sm:$0xff]  }
  0x54   :  { %v2109_v55 = vld [vmem:[%s2941_s2 + $0xa0] sm:$0xff]  }
  0x55   :  { %v2111_v57 = vld [vmem:[%s2941_s2 + $0x120] sm:$0xff]  }
  0x56   :  { %321 = vperm.xlu0 %2074, %v58_v61  }
  0x57   :  { %324 = vperm.xlu1 %2075, %v59_v62   ;;  %v2113_v62 = vld [vmem:[%s2941_s2 + $0xa8] sm:$0xff]  }
  0x5a   :  { %327 = vperm.xlu0 %2074, %v60_v63   ;;  %v2962_v63 = vmov 0 }
  0x5b   :  { %330 = vperm.xlu1 %2075, %v61_v0   ;;  %v2115_v0 = vld [vmem:[%s2941_s2 + $0x128] sm:$0xff]  }
  0x5e   :  { %333 = vperm.xlu0 %2074, %v62_v1   ;;  %v2116_v1 = vld [vmem:[%s2941_s2 + $0xf0] sm:$0xff]  }
  0x5f   :  { %336 = vperm.xlu1 %2075, %v63_v2   ;;  %v2118_v2 = vld [vmem:[%s2941_s2 + $0x170] sm:$0xff]  }
  0x62   :  { %339 = vperm.xlu0 %2074, %v64_v3  }
  0x63   :  { %342 = vperm.xlu1 %2075, %v65_v4  }
  0x66   :  { %345 = vperm.xlu0 %2074, %v66_v5   ;;  %v2117_v5 = vld [vmem:[%s2941_s2 + $0xb0] sm:$0xff]  }
  0x67   :  { %348 = vperm.xlu1 %2075, %v67_v6  }
  0x6a   :  { %351 = vperm.xlu0 %2074, %v68_v7   ;;  %v2119_v7 = vld [vmem:[%s2941_s2 + $0x130] sm:$0xff]  }
  0x6b   :  { %354 = vperm.xlu1 %2075, %v69_v8   ;;  %v2120_v8 = vld [vmem:[%s2941_s2 + $0xf8] sm:$0xff]  }
  0x6e   :  { %357 = vperm.xlu0 %2074, %v70_v9   ;;  %v2122_v9 = vld [vmem:[%s2941_s2 + $0x178] sm:$0xff]  }
  0x6f   :  { %360 = vperm.xlu1 %2075, %v71_v10  }
  0x72   :  { %363 = vperm.xlu0 %2074, %v72_v11  }
  0x73   :  { %366 = vperm.xlu1 %2075, %v73_v12   ;;  %v2121_v12 = vld [vmem:[%s2941_s2 + $0xb8] sm:$0xff]  }
  0x76   :  { %369 = vperm.xlu0 %2074, %v74_v13   ;;  %v2966_v13 = vmov 0 }
  0x77   :  { %372 = vperm.xlu1 %2075, %v75_v14   ;;  %v2123_v14 = vld [vmem:[%s2941_s2 + $0x138] sm:$0xff]   ;;  %s2150_s2 = smov [#allocation2]  }
  0x78   :  { %s1402_s1 = sshll.u32 %s2150_s2, 4  ;;  %s1403_s1 = int_to_ptr.vmem [resolvable:$true] %s1402_s1 }
  0x79   :  { %s2124_s13 = scalar_lea.vmem %s1403_s1, 4096  ;;  %p2129_p1 = scmp.lt.s32.totalorder %s1403_s1, %s1403_s1 }
  0x7a   :  { %375 = vperm.xlu0 %2074, %v76_v15   ;;  %p2125_p0 = scmp.ne.s32.totalorder %s1403_s1, %s2124_s13  ;;  %p2130_p2 = scmp.lt.s32.totalorder %s2124_s13, %s2124_s13 }
  0x7b   :  { %378 = vperm.xlu1 %2075, %v77_v16  }
  0x7c   :  { %p2131_p3 = por %p2130_p2, %p2129_p1 }
  0x7e   :  { %381 = vperm.xlu0 %2074, %v78_v17   ;;  %p2132_p4 = pnand %p2131_p3, %p2125_p0 }
  0x7f   :  { %384 = vperm.xlu1 %2075, %v79_v18  }
  0x81   :  { %v132_v20 = vpop.permute.xlu0 %131 }
  0x82   :  { %v84_v21 = vpop.permute.xlu1 %83  ;;  %vm194_vm0 = vcmp.eq.s32.totalorder %v2419_v22, %v132_v20  ;;  %v2970_v20 = vmov 0 }
  0x83   :  { %vm178_vm3 = vcmp.eq.s32.totalorder %v2419_v22, %v84_v21 }
  0x85   :  { %v135_v23 = vpop.permute.xlu0 %134 }
  0x86   :  { %v87_v24 = vpop.permute.xlu1 %86  ;;  %vm195_vm1 = vcmp.eq.s32.totalorder %v2419_v22, %v135_v23 }
  0x87   :  { %vm179_vm2 = vcmp.eq.s32.totalorder %v2419_v22, %v87_v24  ;;  %vm2428_vm4 = vmpackc.low %vm195_vm1, %vm194_vm0 }
  0x88   :  { %vm2438_vm5 = vmpackc.low %vm179_vm2, %vm178_vm3  ;;  %1558 = vmatprep.mubr.msk.bf16.mxu1 %vm2428_vm4, %v2149_v30 }
  0x89   :  { %1526 = vmatprep.mubr.msk.bf16.mxu0 %vm2438_vm5, %v2149_v30  ;;  %1560 = vmatmul.mubr.msk.bf16.vlgmr.msra.gmra.mrb[0].mxu1 %vm2428_vm4, %v2149_v30  ;;  %v138_v32 = vpop.permute.xlu0 %137 }
  0x8a   :  { %v141_v33 = vpop.permute.xlu1 %140  ;;  %1830 = vmatpush3.bf16.msra.mxu1 %v2093_v25  ;;  %vm196_vm6 = vcmp.eq.s32.totalorder %v2419_v22, %v138_v32  ;;  %1528 = vmatmul.mubr.msk.bf16.vlgmr.msra.gmra.mrb[0].mxu0 %vm2438_vm5, %v2149_v30 }
  0x8b   :  { %vm197_vm7 = vcmp.eq.s32.totalorder %v2419_v22, %v141_v33  ;;  %1942 = vmatpush3.bf16.msra.mxu0 %v2095_v27  ;;  %1831 = vmatprep.subr.bf16.mxu1 %v2096_v28  ;;  %v2974_v28 = vmov 0 }
  0x8c   :  { %vm2462_vm8 = vmpackc.low %vm197_vm7, %vm196_vm6  ;;  %1943 = vmatprep.subr.bf16.mxu0 %v2098_v31 }
  0x8d   :  { %v2955_v35 = vsel %vm2462_vm8, 4294967295, %v2954_v35  ;;  %1562 = vmatprep.mubr.msk.bf16.mxu1 %vm2462_vm8, %v2149_v30  ;;  %v90_v39 = vpop.permute.xlu0 %89 }
  0x8e   :  { %v93_v40 = vpop.permute.xlu1 %92  ;;  %vm180_vm9 = vcmp.eq.s32.totalorder %v2419_v22, %v90_v39  ;;  %1832 = vmatpush3.bf16.msra.mxu1 %v2097_v34 }
  0x8f   :  { %vm181_vm10 = vcmp.eq.s32.totalorder %v2419_v22, %v93_v40  ;;  %1944 = vmatpush3.bf16.msra.mxu0 %v2099_v36  ;;  %1833 = vmatprep.subr.bf16.mxu1 %v2100_v37  ;;  %v2978_v37 = vmov 0 }
  0x90   :  { %vm2483_vm11 = vmpackc.low %vm181_vm10, %vm180_vm9  ;;  %1945 = vmatprep.subr.bf16.mxu0 %v2102_v38 }
  0x91   :  { %1530 = vmatprep.mubr.msk.bf16.mxu0 %vm2483_vm11, %v2149_v30  ;;  %v144_v46 = vpop.permute.xlu0 %143  ;;  %1564 = vmatmul.mubr.msk.bf16.gmra.mrb[4].mxu1 %vm2462_vm8, %v2149_v30 }
  0x92   :  { %v147_v47 = vpop.permute.xlu1 %146  ;;  %vm198_vm12 = vcmp.eq.s32.totalorder %v2419_v22, %v144_v46  ;;  %1532 = vmatmul.mubr.msk.bf16.gmra.mrb[4].mxu0 %vm2483_vm11, %v2149_v30  ;;  %1834 = vmatpush3.bf16.msra.mxu1 %v2101_v41 }
  0x93   :  { %vm199_vm13 = vcmp.eq.s32.totalorder %v2419_v22, %v147_v47  ;;  %1946 = vmatpush3.bf16.msra.mxu0 %v2103_v43  ;;  %1835 = vmatprep.subr.bf16.mxu1 %v2104_v44 }
  0x94   :  { %vm2510_vm14 = vmpackc.low %vm199_vm13, %vm198_vm12  ;;  %1947 = vmatprep.subr.bf16.mxu0 %v2106_v45 }
  0x95   :  { %v2959_v49 = vsel %vm2510_vm14, 4294967295, %v2958_v49  ;;  %1566 = vmatprep.mubr.msk.bf16.mxu1 %vm2510_vm14, %v2149_v30  ;;  %v96_v53 = vpop.permute.xlu0 %95 }
  0x96   :  { %v99_v54 = vpop.permute.xlu1 %98  ;;  %vm182_vm15 = vcmp.eq.s32.totalorder %v2419_v22, %v96_v53  ;;  %1836 = vmatpush3.bf16.msra.mxu1 %v2105_v48 }
  0x97   :  { %vm183_vm0 = vcmp.eq.s32.totalorder %v2419_v22, %v99_v54  ;;  %1948 = vmatpush3.bf16.msra.mxu0 %v2107_v50  ;;  %1837 = vmatprep.subr.bf16.mxu1 %v2108_v51 }
  0x98   :  { %vm2531_vm1 = vmpackc.low %vm183_vm0, %vm182_vm15  ;;  %1949 = vmatprep.subr.bf16.mxu0 %v2110_v52 }
  0x99   :  { %1534 = vmatprep.mubr.msk.bf16.mxu0 %vm2531_vm1, %v2149_v30  ;;  %v150_v60 = vpop.permute.xlu0 %149  ;;  %1568 = vmatmul.mubr.msk.bf16.gmra.mrb[8].mxu1 %vm2510_vm14, %v2149_v30 }
  0x9a   :  { %v153_v61 = vpop.permute.xlu1 %152  ;;  %vm200_vm2 = vcmp.eq.s32.totalorder %v2419_v22, %v150_v60  ;;  %1536 = vmatmul.mubr.msk.bf16.gmra.mrb[8].mxu0 %vm2531_vm1, %v2149_v30  ;;  %1838 = vmatpush3.bf16.msra.mxu1 %v2109_v55 }
  0x9b   :  { %vm201_vm3 = vcmp.eq.s32.totalorder %v2419_v22, %v153_v61  ;;  %1950 = vmatpush3.bf16.msra.mxu0 %v2111_v57  ;;  %1839 = vmatprep.subr.bf16.mxu1 %v2112_v58 }
  0x9c   :  { %vm2558_vm6 = vmpackc.low %vm201_vm3, %vm200_vm2  ;;  %1951 = vmatprep.subr.bf16.mxu0 %v2114_v59 }
  0x9d   :  { %v2963_v63 = vsel %vm2558_vm6, 4294967295, %v2962_v63  ;;  %1570 = vmatprep.mubr.msk.bf16.mxu1 %vm2558_vm6, %v2149_v30  ;;  %v102_v3 = vpop.permute.xlu0 %101 }
  0x9e   :  { %v105_v4 = vpop.permute.xlu1 %104  ;;  %vm184_vm7 = vcmp.eq.s32.totalorder %v2419_v22, %v102_v3  ;;  %1840 = vmatpush3.bf16.msra.mxu1 %v2113_v62 }
  0x9f   :  { %vm185_vm9 = vcmp.eq.s32.totalorder %v2419_v22, %v105_v4  ;;  %1952 = vmatpush3.bf16.msra.mxu0 %v2115_v0  ;;  %1841 = vmatprep.subr.bf16.mxu1 %v2116_v1 }
  0xa0   :  { %vm2579_vm10 = vmpackc.low %vm185_vm9, %vm184_vm7  ;;  %1953 = vmatprep.subr.bf16.mxu0 %v2118_v2 }
  0xa1   :  { %1538 = vmatprep.mubr.msk.bf16.mxu0 %vm2579_vm10, %v2149_v30  ;;  %v156_v10 = vpop.permute.xlu0 %155  ;;  %1572 = vmatmul.mubr.msk.bf16.gmra.mrb[12].mxu1 %vm2558_vm6, %v2149_v30 }
  0xa2   :  { %v159_v11 = vpop.permute.xlu1 %158  ;;  %vm202_vm12 = vcmp.eq.s32.totalorder %v2419_v22, %v156_v10  ;;  %1540 = vmatmul.mubr.msk.bf16.gmra.mrb[12].mxu0 %vm2579_vm10, %v2149_v30  ;;  %1842 = vmatpush3.bf16.msra.mxu1 %v2117_v5 }
  0xa3   :  { %vm203_vm13 = vcmp.eq.s32.totalorder %v2419_v22, %v159_v11  ;;  %1954 = vmatpush3.bf16.msra.mxu0 %v2119_v7  ;;  %1843 = vmatprep.subr.bf16.mxu1 %v2120_v8 }
  0xa4   :  { %vm2606_vm15 = vmpackc.low %vm203_vm13, %vm202_vm12  ;;  %1955 = vmatprep.subr.bf16.mxu0 %v2122_v9 }
  0xa5   :  { %v2967_v13 = vsel %vm2606_vm15, 4294967295, %v2966_v13  ;;  %1574 = vmatprep.mubr.msk.bf16.mxu1 %vm2606_vm15, %v2149_v30  ;;  %v108_v15 = vpop.permute.xlu0 %107 }
  0xa6   :  { %v111_v16 = vpop.permute.xlu1 %110  ;;  %vm186_vm0 = vcmp.eq.s32.totalorder %v2419_v22, %v108_v15  ;;  %1844 = vmatpush3.bf16.msra.mxu1 %v2121_v12 }
  0xa7   :  { %vm187_vm2 = vcmp.eq.s32.totalorder %v2419_v22, %v111_v16  ;;  %1956 = vmatpush3.bf16.msra.mxu0 %v2123_v14 }
  0xa8   :  { %vm2618_vm3 = vmpackc.low %vm187_vm2, %vm186_vm0 }
  0xa9   :  { %1542 = vmatprep.mubr.msk.bf16.mxu0 %vm2618_vm3, %v2149_v30  ;;  %v162_v18 = vpop.permute.xlu0 %161  ;;  %1576 = vmatmul.mubr.msk.bf16.gmra.mrb[16].mxu1 %vm2606_vm15, %v2149_v30 }
  0xaa   :  { %v165_v19 = vpop.permute.xlu1 %164  ;;  %vm204_vm7 = vcmp.eq.s32.totalorder %v2419_v22, %v162_v18  ;;  %1544 = vmatmul.mubr.msk.bf16.gmra.mrb[16].mxu0 %vm2618_vm3, %v2149_v30 }
  0xab   :  { %vm205_vm9 = vcmp.eq.s32.totalorder %v2419_v22, %v165_v19 }
  0xac   :  { %vm2633_vm12 = vmpackc.low %vm205_vm9, %vm204_vm7 }
  0xad   :  { %v2971_v20 = vsel %vm2633_vm12, 4294967295, %v2970_v20  ;;  %1578 = vmatprep.mubr.msk.bf16.mxu1 %vm2633_vm12, %v2149_v30  ;;  %v114_v21 = vpop.permute.xlu0 %113 }
  0xae   :  { %v117_v23 = vpop.permute.xlu1 %116  ;;  %vm188_vm13 = vcmp.eq.s32.totalorder %v2419_v22, %v114_v21 }
  0xaf   :  { %vm189_vm0 = vcmp.eq.s32.totalorder %v2419_v22, %v117_v23 }
  0xb0   :  { %vm2642_vm2 = vmpackc.low %vm189_vm0, %vm188_vm13 }
  0xb1   :  { %1546 = vmatprep.mubr.msk.bf16.mxu0 %vm2642_vm2, %v2149_v30  ;;  %v168_v25 = vpop.permute.xlu0 %167  ;;  %1580 = vmatmul.mubr.msk.bf16.gmra.mrb[20].mxu1 %vm2633_vm12, %v2149_v30 }
  0xb2   :  { %v171_v27 = vpop.permute.xlu1 %170  ;;  %vm206_vm7 = vcmp.eq.s32.totalorder %v2419_v22, %v168_v25  ;;  %1548 = vmatmul.mubr.msk.bf16.gmra.mrb[20].mxu0 %vm2642_vm2, %v2149_v30 }
  0xb3   :  { %vm207_vm9 = vcmp.eq.s32.totalorder %v2419_v22, %v171_v27 }
  0xb4   :  { %vm2657_vm13 = vmpackc.low %vm207_vm9, %vm206_vm7 }
  0xb5   :  { %v2975_v28 = vsel %vm2657_vm13, 4294967295, %v2974_v28  ;;  %1582 = vmatprep.mubr.msk.bf16.mxu1 %vm2657_vm13, %v2149_v30  ;;  %v120_v31 = vpop.permute.xlu0 %119 }
  0xb6   :  { %v123_v32 = vpop.permute.xlu1 %122  ;;  %vm190_vm0 = vcmp.eq.s32.totalorder %v2419_v22, %v120_v31 }
  0xb7   :  { %vm191_vm12 = vcmp.eq.s32.totalorder %v2419_v22, %v123_v32 }
  0xb8   :  { %vm2666_vm15 = vmpackc.low %vm191_vm12, %vm190_vm0 }
  0xb9   :  { %1550 = vmatprep.mubr.msk.bf16.mxu0 %vm2666_vm15, %v2149_v30  ;;  %v174_v34 = vpop.permute.xlu0 %173  ;;  %1584 = vmatmul.mubr.msk.bf16.gmra.mrb[24].mxu1 %vm2657_vm13, %v2149_v30 }
  0xba   :  { %v177_v36 = vpop.permute.xlu1 %176  ;;  %vm208_vm7 = vcmp.eq.s32.totalorder %v2419_v22, %v174_v34  ;;  %1552 = vmatmul.mubr.msk.bf16.gmra.mrb[24].mxu0 %vm2666_vm15, %v2149_v30 }
  0xbb   :  { %vm209_vm12 = vcmp.eq.s32.totalorder %v2419_v22, %v177_v36 }
  0xbc   :  { %vm2681_vm9 = vmpackc.low %vm209_vm12, %vm208_vm7 }
  0xbd   :  { %v2979_v37 = vsel %vm2681_vm9, 4294967295, %v2978_v37  ;;  %1586 = vmatprep.mubr.msk.bf16.mxu1 %vm2681_vm9, %v2149_v30  ;;  %v126_v38 = vpop.permute.xlu0 %125 }
  0xbe   :  { %v129_v39 = vpop.permute.xlu1 %128  ;;  %vm192_vm0 = vcmp.eq.s32.totalorder %v2419_v22, %v126_v38 }
  0xbf   :  { %vm193_vm13 = vcmp.eq.s32.totalorder %v2419_v22, %v129_v39 }
  0xc0   :  { %vm2690_vm6 = vmpackc.low %vm193_vm13, %vm192_vm0 }
  0xc1   :  { %1554 = vmatprep.mubr.msk.bf16.mxu0 %vm2690_vm6, %v2149_v30  ;;  %v292_v41 = vpop.permute.xlu0 %291  ;;  %1588 = vmatmul.mubr.msk.bf16.gmra.mrb[28].mxu1 %vm2681_vm9, %v2149_v30 }
  0xc2   :  { %v295_v43 = vpop.permute.xlu1 %294  ;;  %vm386_vm7 = vcmp.eq.s32.totalorder %v2419_v22, %v292_v41  ;;  %1556 = vmatmul.mubr.msk.bf16.gmra.mrb[28].mxu0 %vm2690_vm6, %v2149_v30 }
  0xc3   :  { %vm387_vm13 = vcmp.eq.s32.totalorder %v2419_v22, %v295_v43 }
  0xc4   :  { %vm1589_vm12 = vmpackc.low %vm387_vm13, %vm386_vm7 }
  0xc5   :  { %1590 = vmatprep.mubr.msk.bf16.mxu1 %vm1589_vm12, %v2149_v30  ;;  %1654 = vmatprep.mubr.msk.bf16.mxu0 %vm1589_vm12, %v2149_v30  ;;  %v298_v44 = vpop.permute.xlu0 %297 }
  0xc6   :  { %v301_v45 = vpop.permute.xlu1 %300  ;;  %vm388_vm0 = vcmp.eq.s32.totalorder %v2419_v22, %v298_v44 }
  0xc7   :  { %vm389_vm9 = vcmp.eq.s32.totalorder %v2419_v22, %v301_v45 }
  0xc8   :  { %vm1593_vm14 = vmpackc.low %vm389_vm9, %vm388_vm0 }
  0xc9   :  { %1592 = vmatmul.mubr.msk.bf16.vlgmr.msra.gmra.mrb[32].mxu1 %vm2438_vm5, %v2149_v30  ;;  %v304_v46 = vpop.permute.xlu0 %303 }
  0xca   :  { %1656 = vmatmul.mubr.msk.bf16.vlgmr.msra.gmra.mrb[32].mxu0 %vm1589_vm12, %v2149_v30  ;;  %1594 = vmatprep.mubr.msk.bf16.mxu1 %vm1593_vm14, %v2149_v30  ;;  %v307_v47 = vpop.permute.xlu1 %306  ;;  %vm390_vm7 = vcmp.eq.s32.totalorder %v2419_v22, %v304_v46 }
  0xcb   :  { %1658 = vmatprep.mubr.msk.bf16.mxu0 %vm1593_vm14, %v2149_v30  ;;  %vm391_vm13 = vcmp.eq.s32.totalorder %v2419_v22, %v307_v47 }
  0xcc   :  { %vm1597_vm8 = vmpackc.low %vm391_vm13, %vm390_vm7 }
  0xcd   :  { %v310_v29 = vpop.permute.xlu0 %309 }
  0xce   :  { %v313_v48 = vpop.permute.xlu1 %312  ;;  %vm392_vm5 = vcmp.eq.s32.totalorder %v2419_v22, %v310_v29 }
  0xcf   :  { %vm393_vm9 = vcmp.eq.s32.totalorder %v2419_v22, %v313_v48 }
  0xd0   :  { %vm1601_vm12 = vmpackc.low %vm393_vm9, %vm392_vm5 }
  0xd1   :  { %1596 = vmatmul.mubr.msk.bf16.gmra.mrb[36].mxu1 %vm2483_vm11, %v2149_v30  ;;  %v316_v42 = vpop.permute.xlu0 %315 }
  0xd2   :  { %1660 = vmatmul.mubr.msk.bf16.gmra.mrb[36].mxu0 %vm1593_vm14, %v2149_v30  ;;  %1598 = vmatprep.mubr.msk.bf16.mxu1 %vm1597_vm8, %v2149_v30  ;;  %v319_v50 = vpop.permute.xlu1 %318  ;;  %vm394_vm11 = vcmp.eq.s32.totalorder %v2419_v22, %v316_v42 }
  0xd3   :  { %1662 = vmatprep.mubr.msk.bf16.mxu0 %vm1597_vm8, %v2149_v30  ;;  %vm395_vm14 = vcmp.eq.s32.totalorder %v2419_v22, %v319_v50 }
  0xd4   :  { %vm1605_vm0 = vmpackc.low %vm395_vm14, %vm394_vm11 }
  0xd5   :  { %v322_v51 = vpop.permute.xlu0 %321 }
  0xd6   :  { %v325_v52 = vpop.permute.xlu1 %324 }
  0xd9   :  { %1600 = vmatmul.mubr.msk.bf16.gmra.mrb[40].mxu1 %vm2531_vm1, %v2149_v30  ;;  %vm397_vm1 = vcmp.eq.s32.totalorder %v2419_v22, %v325_v52  ;;  %v328_v53 = vpop.permute.xlu0 %327 }
  0xda   :  { %1664 = vmatmul.mubr.msk.bf16.gmra.mrb[40].mxu0 %vm1597_vm8, %v2149_v30  ;;  %1602 = vmatprep.mubr.msk.bf16.mxu1 %vm1601_vm12, %v2149_v30  ;;  %vm396_vm8 = vcmp.eq.s32.totalorder %v2419_v22, %v322_v51  ;;  %v331_v54 = vpop.permute.xlu1 %330 }
  0xdb   :  { %1666 = vmatprep.mubr.msk.bf16.mxu0 %vm1601_vm12, %v2149_v30  ;;  %vm1609_vm7 = vmpackc.low %vm397_vm1, %vm396_vm8  ;;  %vm399_vm13 = vcmp.eq.s32.totalorder %v2419_v22, %v331_v54 }
  0xdd   :  { %v334_v55 = vpop.permute.xlu0 %333 }
  0xde   :  { %v337_v56 = vpop.permute.xlu1 %336 }
  0xdf   :  { %vm401_vm9 = vcmp.eq.s32.totalorder %v2419_v22, %v337_v56 }
  0xe1   :  { %1604 = vmatmul.mubr.msk.bf16.gmra.mrb[44].mxu1 %vm2579_vm10, %v2149_v30  ;;  %vm398_vm10 = vcmp.eq.s32.totalorder %v2419_v22, %v328_v53  ;;  %v340_v57 = vpop.permute.xlu0 %339 }
  0xe2   :  { %1668 = vmatmul.mubr.msk.bf16.gmra.mrb[44].mxu0 %vm1601_vm12, %v2149_v30  ;;  %1606 = vmatprep.mubr.msk.bf16.mxu1 %vm1605_vm0, %v2149_v30  ;;  %vm1613_vm5 = vmpackc.low %vm399_vm13, %vm398_vm10  ;;  %v343_v58 = vpop.permute.xlu1 %342  ;;  %vm2982_vm10 = vnez %v2955_v35 }
  0xe3   :  { %1670 = vmatprep.mubr.msk.bf16.mxu0 %vm1605_vm0, %v2149_v30  ;;  %vm403_vm11 = vcmp.eq.s32.totalorder %v2419_v22, %v343_v58 }
  0xe5   :  { %v346_v59 = vpop.permute.xlu0 %345 }
  0xe6   :  { %v349_v60 = vpop.permute.xlu1 %348 }
  0xe9   :  { %1608 = vmatmul.mubr.msk.bf16.gmra.mrb[48].mxu1 %vm2618_vm3, %v2149_v30  ;;  %vm400_vm3 = vcmp.eq.s32.totalorder %v2419_v22, %v334_v55  ;;  %v352_v61 = vpop.permute.xlu0 %351 }
  0xea   :  { %1672 = vmatmul.mubr.msk.bf16.gmra.mrb[48].mxu0 %vm1605_vm0, %v2149_v30  ;;  %1610 = vmatprep.mubr.msk.bf16.mxu1 %vm1609_vm7, %v2149_v30  ;;  %vm1617_vm12 = vmpackc.low %vm401_vm9, %vm400_vm3  ;;  %vm405_vm0 = vcmp.eq.s32.totalorder %v2419_v22, %v349_v60  ;;  %v355_v62 = vpop.permute.xlu1 %354  ;;  %vm2983_vm3 = vnez %v2959_v49 }
  0xeb   :  { %1674 = vmatprep.mubr.msk.bf16.mxu0 %vm1609_vm7, %v2149_v30  ;;  %vm407_vm1 = vcmp.eq.s32.totalorder %v2419_v22, %v355_v62 }
  0xed   :  { %v358_v26 = vpop.permute.xlu0 %357 }
  0xee   :  { %v361_v0 = vpop.permute.xlu1 %360 }
  0xef   :  { %vm409_vm13 = vcmp.eq.s32.totalorder %v2419_v22, %v361_v0 }
  0xf1   :  { %1612 = vmatmul.mubr.msk.bf16.gmra.mrb[52].mxu1 %vm2642_vm2, %v2149_v30  ;;  %vm402_vm2 = vcmp.eq.s32.totalorder %v2419_v22, %v340_v57  ;;  %v364_v35 = vpop.permute.xlu0 %363 }
  0xf2   :  { %1676 = vmatmul.mubr.msk.bf16.gmra.mrb[52].mxu0 %vm1609_vm7, %v2149_v30  ;;  %1614 = vmatprep.mubr.msk.bf16.mxu1 %vm1613_vm5, %v2149_v30  ;;  %vm1621_vm14 = vmpackc.low %vm403_vm11, %vm402_vm2  ;;  %v367_v1 = vpop.permute.xlu1 %366  ;;  %vm410_vm9 = vcmp.eq.s32.totalorder %v2419_v22, %v364_v35  ;;  %vm2984_vm11 = vnez %v2963_v63 }
  0xf3   :  { %1678 = vmatprep.mubr.msk.bf16.mxu0 %vm1613_vm5, %v2149_v30 }
  0xf5   :  { %v370_v49 = vpop.permute.xlu0 %369 }
  0xf6   :  { %v373_v2 = vpop.permute.xlu1 %372 }
  0xf9   :  { %1616 = vmatmul.mubr.msk.bf16.gmra.mrb[56].mxu1 %vm2666_vm15, %v2149_v30  ;;  %vm404_vm15 = vcmp.eq.s32.totalorder %v2419_v22, %v346_v59  ;;  %v376_v63 = vpop.permute.xlu0 %375 }
  0xfa   :  { %1680 = vmatmul.mubr.msk.bf16.gmra.mrb[56].mxu0 %vm1613_vm5, %v2149_v30  ;;  %1618 = vmatprep.mubr.msk.bf16.mxu1 %vm1617_vm12, %v2149_v30  ;;  %vm1625_vm8 = vmpackc.low %vm405_vm0, %vm404_vm15  ;;  %vm413_vm15 = vcmp.eq.s32.totalorder %v2419_v22, %v373_v2  ;;  %v379_v3 = vpop.permute.xlu1 %378 }
  0xfb   :  { %1682 = vmatprep.mubr.msk.bf16.mxu0 %vm1617_vm12, %v2149_v30 }
  0xfd   :  { %v382_v4 = vpop.permute.xlu0 %381 }
  0xfe   :  { %v385_v5 = vpop.permute.xlu1 %384 }
 0x101   :  { %1620 = vmatmul.mubr.msk.bf16.gmra.mrb[60].mxu1 %vm2690_vm6, %v2149_v30  ;;  %vm406_vm6 = vcmp.eq.s32.totalorder %v2419_v22, %v352_v61 }
 0x102   :  { %1684 = vmatmul.mubr.msk.bf16.gmra.mrb[60].mxu0 %vm1617_vm12, %v2149_v30  ;;  %1622 = vmatprep.mubr.msk.bf16.mxu1 %vm1621_vm14, %v2149_v30  ;;  %vm1629_vm7 = vmpackc.low %vm407_vm1, %vm406_vm6  ;;  %vm411_vm12 = vcmp.eq.s32.totalorder %v2419_v22, %v367_v1  ;;  %vm414_vm6 = vcmp.eq.s32.totalorder %v2419_v22, %v376_v63  ;;  %vm415_vm1 = vcmp.eq.s32.totalorder %v2419_v22, %v379_v3 }
 0x103   :  { %1686 = vmatprep.mubr.msk.bf16.mxu0 %vm1621_vm14, %v2149_v30  ;;  %vm1637_vm2 = vmpackc.low %vm411_vm12, %vm410_vm9  ;;  %vm2988_vm9 = vnez %v2979_v37 }
 0x109   :  { %1624 = vmatmul.mubr.msk.bf16.gmra.mrb[64].mxu1 %vm2428_vm4, %v2149_v30  ;;  %vm408_vm4 = vcmp.eq.s32.totalorder %v2419_v22, %v358_v26 }
 0x10a   :  { %1688 = vmatmul.mubr.msk.bf16.gmra.mrb[64].mxu0 %vm1621_vm14, %v2149_v30  ;;  %1626 = vmatprep.mubr.msk.bf16.mxu1 %vm1625_vm8, %v2149_v30  ;;  %vm1633_vm5 = vmpackc.low %vm409_vm13, %vm408_vm4  ;;  %vm412_vm14 = vcmp.eq.s32.totalorder %v2419_v22, %v370_v49  ;;  %vm416_vm4 = vcmp.eq.s32.totalorder %v2419_v22, %v382_v4  ;;  %vm417_vm13 = vcmp.eq.s32.totalorder %v2419_v22, %v385_v5 }
 0x10b   :  { %1690 = vmatprep.mubr.msk.bf16.mxu0 %vm1625_vm8, %v2149_v30  ;;  %vm1641_vm0 = vmpackc.low %vm413_vm15, %vm412_vm14 }
 0x111   :  { %1628 = vmatmul.mubr.msk.bf16.gmra.mrb[68].mxu1 %vm2982_vm10, %v2149_v30  ;;  %vm2986_vm10 = vnez %v2971_v20 }
 0x112   :  { %1692 = vmatmul.mubr.msk.bf16.gmra.mrb[68].mxu0 %vm1625_vm8, %v2149_v30  ;;  %1630 = vmatprep.mubr.msk.bf16.mxu1 %vm1629_vm7, %v2149_v30  ;;  %vm2985_vm8 = vnez %v2967_v13 }
 0x113   :  { %1694 = vmatprep.mubr.msk.bf16.mxu0 %vm1629_vm7, %v2149_v30 }
 0x119   :  { %1632 = vmatmul.mubr.msk.bf16.gmra.mrb[72].mxu1 %vm2983_vm3, %v2149_v30  ;;  %vm2987_vm3 = vnez %v2975_v28 }
 0x11a   :  { %1696 = vmatmul.mubr.msk.bf16.gmra.mrb[72].mxu0 %vm1629_vm7, %v2149_v30  ;;  %1634 = vmatprep.mubr.msk.bf16.mxu1 %vm1633_vm5, %v2149_v30  ;;  %vm1645_vm7 = vmpackc.low %vm415_vm1, %vm414_vm6 }
 0x11b   :  { %1698 = vmatprep.mubr.msk.bf16.mxu0 %vm1633_vm5, %v2149_v30 }
 0x121   :  { %1636 = vmatmul.mubr.msk.bf16.gmra.mrb[76].mxu1 %vm2984_vm11, %v2149_v30 }
 0x122   :  { %1700 = vmatmul.mubr.msk.bf16.gmra.mrb[76].mxu0 %vm1633_vm5, %v2149_v30  ;;  %1638 = vmatprep.mubr.msk.bf16.mxu1 %vm1637_vm2, %v2149_v30  ;;  %vm1649_vm5 = vmpackc.low %vm417_vm13, %vm416_vm4 }
 0x123   :  { %1702 = vmatprep.mubr.msk.bf16.mxu0 %vm1637_vm2, %v2149_v30 }
 0x129   :  { %1640 = vmatmul.mubr.msk.bf16.gmra.mrb[80].mxu1 %vm2985_vm8, %v2149_v30 }
 0x12a   :  { %1704 = vmatmul.mubr.msk.bf16.gmra.mrb[80].mxu0 %vm1637_vm2, %v2149_v30  ;;  %1642 = vmatprep.mubr.msk.bf16.mxu1 %vm1641_vm0, %v2149_v30 }
 0x12b   :  { %1706 = vmatprep.mubr.msk.bf16.mxu0 %vm1641_vm0, %v2149_v30 }
 0x131   :  { %1644 = vmatmul.mubr.msk.bf16.gmra.mrb[84].mxu1 %vm2986_vm10, %v2149_v30 }
 0x132   :  { %1708 = vmatmul.mubr.msk.bf16.gmra.mrb[84].mxu0 %vm1641_vm0, %v2149_v30  ;;  %1646 = vmatprep.mubr.msk.bf16.mxu1 %vm1645_vm7, %v2149_v30 }
 0x133   :  { %1710 = vmatprep.mubr.msk.bf16.mxu0 %vm1645_vm7, %v2149_v30 }
 0x139   :  { %1648 = vmatmul.mubr.msk.bf16.gmra.mrb[88].mxu1 %vm2987_vm3, %v2149_v30 }
 0x13a   :  { %1712 = vmatmul.mubr.msk.bf16.gmra.mrb[88].mxu0 %vm1645_vm7, %v2149_v30  ;;  %1650 = vmatprep.mubr.msk.bf16.mxu1 %vm1649_vm5, %v2149_v30 }
 0x13b   :  { %1714 = vmatprep.mubr.msk.bf16.mxu0 %vm1649_vm5, %v2149_v30 }
 0x141   :  { %1652 = vmatmul.mubr.msk.bf16.gmra.mrb[92].mxu1 %vm2988_vm9, %v2149_v30 }
 0x142   :  { %1716 = vmatmul.mubr.msk.bf16.gmra.mrb[92].mxu0 %vm1649_vm5, %v2149_v30 }
 0x15c   :  { %v1781_v6 = vpop.f32.mrb[0].mxu1 }
 0x15d   :  { %v1733_v7 = vpop.f32.mrb[0].mxu0  ;;  %v1782_v22 = vpop.f32.mrb[1].mxu1 }
 0x15e   :  { %v1734_v8 = vpop.f32.mrb[1].mxu0  ;;  %v2831_v9 = vadd.f32 %v1782_v22, %v1781_v6  ;;  %v1784_v10 = vpop.f32.mrb[2].mxu1 }
 0x15f   :  { %v2833_v11 = vadd.f32 %v1734_v8, %v1733_v7  ;;  %v1736_v12 = vpop.f32.mrb[2].mxu0  ;;  %v1785_v13 = vpop.f32.mrb[3].mxu1 }
 0x160   :  { %v1737_v14 = vpop.f32.mrb[3].mxu0  ;;  %v2835_v15 = vadd.f32 %v1785_v13, %v1784_v10 }
 0x161   :  { %v2837_v16 = vadd.f32 %v1737_v14, %v1736_v12 }
 0x164   :  { %v1787_v17 = vpop.f32.mrb[4].mxu1 }
 0x165   :  { %v1739_v18 = vpop.f32.mrb[4].mxu0  ;;  %v1788_v19 = vpop.f32.mrb[5].mxu1 }
 0x166   :  { %v1740_v30 = vpop.f32.mrb[5].mxu0  ;;  %v2839_v20 = vadd.f32 %v1788_v19, %v1787_v17  ;;  %v1790_v21 = vpop.f32.mrb[6].mxu1 }
 0x167   :  { %v2841_v23 = vadd.f32 %v1740_v30, %v1739_v18  ;;  %v1742_v24 = vpop.f32.mrb[6].mxu0  ;;  %v1791_v25 = vpop.f32.mrb[7].mxu1 }
 0x168   :  { %v1743_v27 = vpop.f32.mrb[7].mxu0  ;;  %v2843_v28 = vadd.f32 %v1791_v25, %v1790_v21 }
 0x169   :  { %v2845_v31 = vadd.f32 %v1743_v27, %v1742_v24 }
 0x16c   :  { %v1793_v32 = vpop.f32.mrb[8].mxu1 }
 0x16d   :  { %v1745_v33 = vpop.f32.mrb[8].mxu0  ;;  %v1794_v34 = vpop.f32.mrb[9].mxu1 }
 0x16e   :  { %v1746_v36 = vpop.f32.mrb[9].mxu0  ;;  %v2847_v37 = vadd.f32 %v1794_v34, %v1793_v32  ;;  %v1796_v38 = vpop.f32.mrb[10].mxu1 }
 0x16f   :  { %v2849_v39 = vadd.f32 %v1746_v36, %v1745_v33  ;;  %v1748_v40 = vpop.f32.mrb[10].mxu0  ;;  %v1797_v41 = vpop.f32.mrb[11].mxu1 }
 0x170   :  { %v1749_v43 = vpop.f32.mrb[11].mxu0  ;;  %v2851_v44 = vadd.f32 %v1797_v41, %v1796_v38 }
 0x171   :  { %v2853_v45 = vadd.f32 %v1749_v43, %v1748_v40 }
 0x174   :  { %v1799_v46 = vpop.f32.mrb[12].mxu1 }
 0x175   :  { %v1751_v47 = vpop.f32.mrb[12].mxu0  ;;  %v1800_v29 = vpop.f32.mrb[13].mxu1 }
 0x176   :  { %v1752_v48 = vpop.f32.mrb[13].mxu0  ;;  %v2855_v42 = vadd.f32 %v1800_v29, %v1799_v46  ;;  %v1802_v50 = vpop.f32.mrb[14].mxu1 }
 0x177   :  { %v2857_v51 = vadd.f32 %v1752_v48, %v1751_v47  ;;  %v1754_v52 = vpop.f32.mrb[14].mxu0  ;;  %v1803_v53 = vpop.f32.mrb[15].mxu1 }
 0x178   :  { %v1755_v54 = vpop.f32.mrb[15].mxu0  ;;  %v2859_v55 = vadd.f32 %v1803_v53, %v1802_v50 }
 0x179   :  { %v2861_v56 = vadd.f32 %v1755_v54, %v1754_v52 }
 0x17c   :  { %v1805_v57 = vpop.f32.mrb[16].mxu1 }
 0x17d   :  { %v1757_v58 = vpop.f32.mrb[16].mxu0  ;;  %v1806_v59 = vpop.f32.mrb[17].mxu1 }
 0x17e   :  { %v1758_v60 = vpop.f32.mrb[17].mxu0  ;;  %v2863_v61 = vadd.f32 %v1806_v59, %v1805_v57  ;;  %v1808_v62 = vpop.f32.mrb[18].mxu1 }
 0x17f   :  { %v2865_v26 = vadd.f32 %v1758_v60, %v1757_v58  ;;  %v1760_v0 = vpop.f32.mrb[18].mxu0  ;;  %v1809_v35 = vpop.f32.mrb[19].mxu1 }
 0x180   :  { %v1761_v1 = vpop.f32.mrb[19].mxu0  ;;  %v2867_v49 = vadd.f32 %v1809_v35, %v1808_v62 }
 0x181   :  { %v2869_v2 = vadd.f32 %v1761_v1, %v1760_v0 }
 0x184   :  { %v1811_v63 = vpop.f32.mrb[20].mxu1 }
 0x185   :  { %v1763_v3 = vpop.f32.mrb[20].mxu0  ;;  %v1812_v4 = vpop.f32.mrb[21].mxu1 }
 0x186   :  { %v1764_v5 = vpop.f32.mrb[21].mxu0  ;;  %v2871_v6 = vadd.f32 %v1812_v4, %v1811_v63  ;;  %v1814_v7 = vpop.f32.mrb[22].mxu1 }
 0x187   :  { %v2873_v22 = vadd.f32 %v1764_v5, %v1763_v3  ;;  %v1766_v8 = vpop.f32.mrb[22].mxu0  ;;  %v1815_v10 = vpop.f32.mrb[23].mxu1 }
 0x188   :  { %v1767_v12 = vpop.f32.mrb[23].mxu0  ;;  %v2875_v13 = vadd.f32 %v1815_v10, %v1814_v7 }
 0x189   :  { %v2877_v14 = vadd.f32 %v1767_v12, %v1766_v8 }
 0x18c   :  { %v1817_v17 = vpop.f32.mrb[24].mxu1 }
 0x18d   :  { %v1769_v18 = vpop.f32.mrb[24].mxu0  ;;  %v1818_v19 = vpop.f32.mrb[25].mxu1 }
 0x18e   :  { %v1770_v30 = vpop.f32.mrb[25].mxu0  ;;  %v2879_v21 = vadd.f32 %v1818_v19, %v1817_v17  ;;  %v1820_v24 = vpop.f32.mrb[26].mxu1 }
 0x18f   :  { %v2881_v25 = vadd.f32 %v1770_v30, %v1769_v18  ;;  %v1772_v27 = vpop.f32.mrb[26].mxu0  ;;  %v1821_v32 = vpop.f32.mrb[27].mxu1 }
 0x190   :  { %v1773_v33 = vpop.f32.mrb[27].mxu0  ;;  %v2883_v34 = vadd.f32 %v1821_v32, %v1820_v24 }
 0x191   :  { %v2885_v36 = vadd.f32 %v1773_v33, %v1772_v27 }
 0x194   :  { %v1823_v38 = vpop.f32.mrb[28].mxu1 }
 0x195   :  { %v1775_v40 = vpop.f32.mrb[28].mxu0  ;;  %v1824_v41 = vpop.f32.mrb[29].mxu1 }
 0x196   :  { %v1776_v43 = vpop.f32.mrb[29].mxu0  ;;  %v2887_v46 = vadd.f32 %v1824_v41, %v1823_v38  ;;  %v1826_v47 = vpop.f32.mrb[30].mxu1 }
 0x197   :  { %v2889_v29 = vadd.f32 %v1776_v43, %v1775_v40  ;;  %v1778_v48 = vpop.f32.mrb[30].mxu0  ;;  %v1827_v50 = vpop.f32.mrb[31].mxu1 }
 0x198   :  { %v1779_v52 = vpop.f32.mrb[31].mxu0  ;;  %v2891_v53 = vadd.f32 %v1827_v50, %v1826_v47 }
 0x199   :  { %v2893_v54 = vadd.f32 %v1779_v52, %v1778_v48 }
 0x19c   :  { %v1845_v57 = vpop.f32.mrb[32].mxu1 }
 0x19d   :  { %v1957_v58 = vpop.f32.mrb[32].mxu0  ;;  %v1846_v59 = vpop.f32.mrb[33].mxu1 }
 0x19e   :  { %v1847_v60 = vadd.f32 %v1846_v59, %v1845_v57  ;;  %v1958_v62 = vpop.f32.mrb[33].mxu0  ;;  %v1848_v0 = vpop.f32.mrb[34].mxu1 }
 0x19f   :  { %v1959_v35 = vadd.f32 %v1958_v62, %v1957_v58  ;;  %v1960_v1 = vpop.f32.mrb[34].mxu0  ;;  %v1849_v63 = vpop.f32.mrb[35].mxu1 }
 0x1a0   :  { %v1078_v3 = vadd.f32 %v1847_v60, %v2833_v11  ;;  %v1850_v4 = vadd.f32 %v1849_v63, %v1848_v0  ;;  %v1961_v5 = vpop.f32.mrb[35].mxu0 }
 0x1a1   :  { %v1962_v7 = vadd.f32 %v1961_v5, %v1960_v1 }
 0x1a2   :  { %v1239_v8 = vadd.f32 %v1959_v35, %v1078_v3  ;;  %v1081_v10 = vadd.f32 %v1850_v4, %v2837_v16 }
 0x1a4   :  { %1365 = vst [vmem:[#allocation2] sm:$0xff] %v1239_v8  ;;  %v1242_v12 = vadd.f32 %v1962_v7, %v1081_v10  ;;  %v1851_v17 = vpop.f32.mrb[36].mxu1 }
 0x1a5   :  { %v1963_v18 = vpop.f32.mrb[36].mxu0  ;;  %v1852_v19 = vpop.f32.mrb[37].mxu1 }
 0x1a6   :  { %1366 = vst [vmem:[#allocation2 + $0x8] sm:$0xff] %v1242_v12  ;;  %v1853_v30 = vadd.f32 %v1852_v19, %v1851_v17  ;;  %v1964_v24 = vpop.f32.mrb[37].mxu0  ;;  %v1854_v27 = vpop.f32.mrb[38].mxu1 }
 0x1a7   :  { %v1965_v32 = vadd.f32 %v1964_v24, %v1963_v18  ;;  %v1966_v33 = vpop.f32.mrb[38].mxu0  ;;  %v1855_v38 = vpop.f32.mrb[39].mxu1 }
 0x1a8   :  { %v1086_v11 = vadd.f32 %v1853_v30, %v2841_v23  ;;  %v1856_v40 = vadd.f32 %v1855_v38, %v1854_v27  ;;  %v1967_v41 = vpop.f32.mrb[39].mxu0 }
 0x1a9   :  { %v1968_v43 = vadd.f32 %v1967_v41, %v1966_v33 }
 0x1aa   :  { %v1247_v47 = vadd.f32 %v1965_v32, %v1086_v11  ;;  %v1089_v16 = vadd.f32 %v1856_v40, %v2845_v31 }
 0x1ac   :  { %1367 = vst [vmem:[#allocation2 + $0x10] sm:$0xff] %v1247_v47  ;;  %v1250_v48 = vadd.f32 %v1968_v43, %v1089_v16  ;;  %v1857_v50 = vpop.f32.mrb[40].mxu1 }
 0x1ad   :  { %v1969_v52 = vpop.f32.mrb[40].mxu0  ;;  %v1858_v57 = vpop.f32.mrb[41].mxu1 }
 0x1ae   :  { %1368 = vst [vmem:[#allocation2 + $0x18] sm:$0xff] %v1250_v48  ;;  %v1859_v58 = vadd.f32 %v1858_v57, %v1857_v50  ;;  %v1970_v59 = vpop.f32.mrb[41].mxu0  ;;  %v1860_v60 = vpop.f32.mrb[42].mxu1 }
 0x1af   :  { %v1971_v62 = vadd.f32 %v1970_v59, %v1969_v52  ;;  %v1972_v0 = vpop.f32.mrb[42].mxu0  ;;  %v1861_v35 = vpop.f32.mrb[43].mxu1 }
 0x1b0   :  { %v1094_v23 = vadd.f32 %v1859_v58, %v2849_v39  ;;  %v1862_v1 = vadd.f32 %v1861_v35, %v1860_v60  ;;  %v1973_v63 = vpop.f32.mrb[43].mxu0 }
 0x1b1   :  { %v1974_v3 = vadd.f32 %v1973_v63, %v1972_v0 }
 0x1b2   :  { %v1255_v4 = vadd.f32 %v1971_v62, %v1094_v23  ;;  %v1097_v31 = vadd.f32 %v1862_v1, %v2853_v45 }
 0x1b4   :  { %1369 = vst [vmem:[#allocation2 + $0x20] sm:$0xff] %v1255_v4  ;;  %v1258_v5 = vadd.f32 %v1974_v3, %v1097_v31  ;;  %v1863_v7 = vpop.f32.mrb[44].mxu1 }
 0x1b5   :  { %v1975_v8 = vpop.f32.mrb[44].mxu0  ;;  %v1864_v10 = vpop.f32.mrb[45].mxu1 }
 0x1b6   :  { %1370 = vst [vmem:[#allocation2 + $0x28] sm:$0xff] %v1258_v5  ;;  %v1865_v12 = vadd.f32 %v1864_v10, %v1863_v7  ;;  %v1976_v17 = vpop.f32.mrb[45].mxu0  ;;  %v1866_v18 = vpop.f32.mrb[46].mxu1 }
 0x1b7   :  { %v1977_v19 = vadd.f32 %v1976_v17, %v1975_v8  ;;  %v1978_v30 = vpop.f32.mrb[46].mxu0  ;;  %v1867_v24 = vpop.f32.mrb[47].mxu1 }
 0x1b8   :  { %v1102_v39 = vadd.f32 %v1865_v12, %v2857_v51  ;;  %v1868_v27 = vadd.f32 %v1867_v24, %v1866_v18  ;;  %v1979_v32 = vpop.f32.mrb[47].mxu0 }
 0x1b9   :  { %v1980_v33 = vadd.f32 %v1979_v32, %v1978_v30 }
 0x1ba   :  { %v1263_v38 = vadd.f32 %v1977_v19, %v1102_v39  ;;  %v1105_v45 = vadd.f32 %v1868_v27, %v2861_v56 }
 0x1bc   :  { %1371 = vst [vmem:[#allocation2 + $0x30] sm:$0xff] %v1263_v38  ;;  %v1266_v11 = vadd.f32 %v1980_v33, %v1105_v45  ;;  %v1869_v40 = vpop.f32.mrb[48].mxu1 }
 0x1bd   :  { %v1981_v41 = vpop.f32.mrb[48].mxu0  ;;  %v1870_v43 = vpop.f32.mrb[49].mxu1 }
 0x1be   :  { %1372 = vst [vmem:[#allocation2 + $0x38] sm:$0xff] %v1266_v11  ;;  %v1871_v47 = vadd.f32 %v1870_v43, %v1869_v40  ;;  %v1982_v16 = vpop.f32.mrb[49].mxu0  ;;  %v1872_v48 = vpop.f32.mrb[50].mxu1 }
 0x1bf   :  { %v1983_v50 = vadd.f32 %v1982_v16, %v1981_v41  ;;  %v1984_v52 = vpop.f32.mrb[50].mxu0  ;;  %v1873_v57 = vpop.f32.mrb[51].mxu1 }
 0x1c0   :  { %v1110_v51 = vadd.f32 %v1871_v47, %v2865_v26  ;;  %v1874_v58 = vadd.f32 %v1873_v57, %v1872_v48  ;;  %v1985_v59 = vpop.f32.mrb[51].mxu0 }
 0x1c1   :  { %v1986_v60 = vadd.f32 %v1985_v59, %v1984_v52 }
 0x1c2   :  { %v1271_v62 = vadd.f32 %v1983_v50, %v1110_v51  ;;  %v1113_v56 = vadd.f32 %v1874_v58, %v2869_v2 }
 0x1c4   :  { %1373 = vst [vmem:[#allocation2 + $0x40] sm:$0xff] %v1271_v62  ;;  %v1274_v0 = vadd.f32 %v1986_v60, %v1113_v56  ;;  %v1875_v35 = vpop.f32.mrb[52].mxu1 }
 0x1c5   :  { %v1987_v23 = vpop.f32.mrb[52].mxu0  ;;  %v1876_v1 = vpop.f32.mrb[53].mxu1 }
 0x1c6   :  { %1374 = vst [vmem:[#allocation2 + $0x48] sm:$0xff] %v1274_v0  ;;  %v1877_v63 = vadd.f32 %v1876_v1, %v1875_v35  ;;  %v1988_v3 = vpop.f32.mrb[53].mxu0  ;;  %v1878_v4 = vpop.f32.mrb[54].mxu1 }
 0x1c7   :  { %v1989_v31 = vadd.f32 %v1988_v3, %v1987_v23  ;;  %v1990_v5 = vpop.f32.mrb[54].mxu0  ;;  %v1879_v7 = vpop.f32.mrb[55].mxu1 }
 0x1c8   :  { %v1118_v26 = vadd.f32 %v1877_v63, %v2873_v22  ;;  %v1880_v8 = vadd.f32 %v1879_v7, %v1878_v4  ;;  %v1991_v10 = vpop.f32.mrb[55].mxu0 }
 0x1c9   :  { %v1992_v12 = vadd.f32 %v1991_v10, %v1990_v5 }
 0x1ca   :  { %v1279_v17 = vadd.f32 %v1989_v31, %v1118_v26  ;;  %v1121_v2 = vadd.f32 %v1880_v8, %v2877_v14 }
 0x1cc   :  { %1375 = vst [vmem:[#allocation2 + $0x50] sm:$0xff] %v1279_v17  ;;  %v1282_v18 = vadd.f32 %v1992_v12, %v1121_v2  ;;  %v1881_v19 = vpop.f32.mrb[56].mxu1 }
 0x1cd   :  { %v1993_v30 = vpop.f32.mrb[56].mxu0  ;;  %v1882_v24 = vpop.f32.mrb[57].mxu1 }
 0x1ce   :  { %1376 = vst [vmem:[#allocation2 + $0x58] sm:$0xff] %v1282_v18  ;;  %v1883_v39 = vadd.f32 %v1882_v24, %v1881_v19  ;;  %v1994_v27 = vpop.f32.mrb[57].mxu0  ;;  %v1884_v32 = vpop.f32.mrb[58].mxu1 }
 0x1cf   :  { %v1995_v33 = vadd.f32 %v1994_v27, %v1993_v30  ;;  %v1996_v38 = vpop.f32.mrb[58].mxu0  ;;  %v1885_v45 = vpop.f32.mrb[59].mxu1 }
 0x1d0   :  { %v1126_v22 = vadd.f32 %v1883_v39, %v2881_v25  ;;  %v1886_v11 = vadd.f32 %v1885_v45, %v1884_v32  ;;  %v1997_v40 = vpop.f32.mrb[59].mxu0 }
 0x1d1   :  { %v1998_v41 = vadd.f32 %v1997_v40, %v1996_v38 }
 0x1d2   :  { %v1287_v43 = vadd.f32 %v1995_v33, %v1126_v22  ;;  %v1129_v14 = vadd.f32 %v1886_v11, %v2885_v36 }
 0x1d4   :  { %1377 = vst [vmem:[#allocation2 + $0x60] sm:$0xff] %v1287_v43  ;;  %v1290_v47 = vadd.f32 %v1998_v41, %v1129_v14  ;;  %v1887_v16 = vpop.f32.mrb[60].mxu1 }
 0x1d5   :  { %v1999_v48 = vpop.f32.mrb[60].mxu0  ;;  %v1888_v50 = vpop.f32.mrb[61].mxu1 }
 0x1d6   :  { %1378 = vst [vmem:[#allocation2 + $0x68] sm:$0xff] %v1290_v47  ;;  %v1889_v52 = vadd.f32 %v1888_v50, %v1887_v16  ;;  %v2000_v57 = vpop.f32.mrb[61].mxu0  ;;  %v1890_v51 = vpop.f32.mrb[62].mxu1 }
 0x1d7   :  { %v2001_v58 = vadd.f32 %v2000_v57, %v1999_v48  ;;  %v2002_v59 = vpop.f32.mrb[62].mxu0  ;;  %v1891_v60 = vpop.f32.mrb[63].mxu1 }
 0x1d8   :  { %v1134_v25 = vadd.f32 %v1889_v52, %v2889_v29  ;;  %v1892_v62 = vadd.f32 %v1891_v60, %v1890_v51  ;;  %v2003_v56 = vpop.f32.mrb[63].mxu0 }
 0x1d9   :  { %v2004_v0 = vadd.f32 %v2003_v56, %v2002_v59 }
 0x1da   :  { %v1295_v35 = vadd.f32 %v2001_v58, %v1134_v25  ;;  %v1137_v36 = vadd.f32 %v1892_v62, %v2893_v54 }
 0x1dc   :  { %1379 = vst [vmem:[#allocation2 + $0x70] sm:$0xff] %v1295_v35  ;;  %v1298_v23 = vadd.f32 %v2004_v0, %v1137_v36  ;;  %v1893_v1 = vpop.f32.mrb[64].mxu1 }
 0x1dd   :  { %v2005_v63 = vpop.f32.mrb[64].mxu0  ;;  %v1894_v3 = vpop.f32.mrb[65].mxu1 }
 0x1de   :  { %1380 = vst [vmem:[#allocation2 + $0x78] sm:$0xff] %v1298_v23  ;;  %v1895_v4 = vadd.f32 %v1894_v3, %v1893_v1  ;;  %v2006_v31 = vpop.f32.mrb[65].mxu0  ;;  %v1896_v5 = vpop.f32.mrb[66].mxu1 }
 0x1df   :  { %v2007_v7 = vadd.f32 %v2006_v31, %v2005_v63  ;;  %v2008_v26 = vpop.f32.mrb[66].mxu0  ;;  %v1897_v8 = vpop.f32.mrb[67].mxu1 }
 0x1e0   :  { %v1142_v29 = vadd.f32 %v1895_v4, %v2831_v9  ;;  %v1898_v10 = vadd.f32 %v1897_v8, %v1896_v5  ;;  %v2009_v12 = vpop.f32.mrb[67].mxu0 }
 0x1e1   :  { %v2010_v17 = vadd.f32 %v2009_v12, %v2008_v26 }
 0x1e2   :  { %v1303_v2 = vadd.f32 %v2007_v7, %v1142_v29  ;;  %v1145_v54 = vadd.f32 %v1898_v10, %v2835_v15 }
 0x1e4   :  { %1381 = vst [vmem:[#allocation2 + $0x80] sm:$0xff] %v1303_v2  ;;  %v1306_v18 = vadd.f32 %v2010_v17, %v1145_v54  ;;  %v1899_v19 = vpop.f32.mrb[68].mxu1 }
 0x1e5   :  { %v2011_v30 = vpop.f32.mrb[68].mxu0  ;;  %v1900_v24 = vpop.f32.mrb[69].mxu1 }
 0x1e6   :  { %1382 = vst [vmem:[#allocation2 + $0x88] sm:$0xff] %v1306_v18  ;;  %v1901_v39 = vadd.f32 %v1900_v24, %v1899_v19  ;;  %v2012_v27 = vpop.f32.mrb[69].mxu0  ;;  %v1902_v32 = vpop.f32.mrb[70].mxu1 }
 0x1e7   :  { %v2013_v33 = vadd.f32 %v2012_v27, %v2011_v30  ;;  %v2014_v38 = vpop.f32.mrb[70].mxu0  ;;  %v1903_v45 = vpop.f32.mrb[71].mxu1 }
 0x1e8   :  { %v1150_v9 = vadd.f32 %v1901_v39, %v2839_v20  ;;  %v1904_v22 = vadd.f32 %v1903_v45, %v1902_v32  ;;  %v2015_v11 = vpop.f32.mrb[71].mxu0 }
 0x1e9   :  { %v2016_v40 = vadd.f32 %v2015_v11, %v2014_v38 }
 0x1ea   :  { %v1311_v41 = vadd.f32 %v2013_v33, %v1150_v9  ;;  %v1153_v15 = vadd.f32 %v1904_v22, %v2843_v28 }
 0x1ec   :  { %1383 = vst [vmem:[#allocation2 + $0x90] sm:$0xff] %v1311_v41  ;;  %v1314_v43 = vadd.f32 %v2016_v40, %v1153_v15  ;;  %v1905_v14 = vpop.f32.mrb[72].mxu1 }
 0x1ed   :  { %v2017_v47 = vpop.f32.mrb[72].mxu0  ;;  %v1906_v16 = vpop.f32.mrb[73].mxu1 }
 0x1ee   :  { %1384 = vst [vmem:[#allocation2 + $0x98] sm:$0xff] %v1314_v43  ;;  %v1907_v48 = vadd.f32 %v1906_v16, %v1905_v14  ;;  %v2018_v50 = vpop.f32.mrb[73].mxu0  ;;  %v1908_v52 = vpop.f32.mrb[74].mxu1 }
 0x1ef   :  { %v2019_v57 = vadd.f32 %v2018_v50, %v2017_v47  ;;  %v2020_v51 = vpop.f32.mrb[74].mxu0  ;;  %v1909_v58 = vpop.f32.mrb[75].mxu1 }
 0x1f0   :  { %v1158_v20 = vadd.f32 %v1907_v48, %v2847_v37  ;;  %v1910_v59 = vadd.f32 %v1909_v58, %v1908_v52  ;;  %v2021_v60 = vpop.f32.mrb[75].mxu0 }
 0x1f1   :  { %v2022_v25 = vadd.f32 %v2021_v60, %v2020_v51 }
 0x1f2   :  { %v1319_v62 = vadd.f32 %v2019_v57, %v1158_v20  ;;  %v1161_v28 = vadd.f32 %v1910_v59, %v2851_v44 }
 0x1f4   :  { %1385 = vst [vmem:[#allocation2 + $0xa0] sm:$0xff] %v1319_v62  ;;  %v1322_v56 = vadd.f32 %v2022_v25, %v1161_v28  ;;  %v1911_v0 = vpop.f32.mrb[76].mxu1 }
 0x1f5   :  { %v2023_v35 = vpop.f32.mrb[76].mxu0  ;;  %v1912_v36 = vpop.f32.mrb[77].mxu1 }
 0x1f6   :  { %1386 = vst [vmem:[#allocation2 + $0xa8] sm:$0xff] %v1322_v56  ;;  %v1913_v23 = vadd.f32 %v1912_v36, %v1911_v0  ;;  %v2024_v1 = vpop.f32.mrb[77].mxu0  ;;  %v1914_v63 = vpop.f32.mrb[78].mxu1 }
 0x1f7   :  { %v2025_v3 = vadd.f32 %v2024_v1, %v2023_v35  ;;  %v2026_v4 = vpop.f32.mrb[78].mxu0  ;;  %v1915_v31 = vpop.f32.mrb[79].mxu1 }
 0x1f8   :  { %v1166_v37 = vadd.f32 %v1913_v23, %v2855_v42  ;;  %v1916_v5 = vadd.f32 %v1915_v31, %v1914_v63  ;;  %v2027_v7 = vpop.f32.mrb[79].mxu0 }
 0x1f9   :  { %v2028_v26 = vadd.f32 %v2027_v7, %v2026_v4 }
 0x1fa   :  { %v1327_v8 = vadd.f32 %v2025_v3, %v1166_v37  ;;  %v1169_v44 = vadd.f32 %v1916_v5, %v2859_v55 }
 0x1fc   :  { %1387 = vst [vmem:[#allocation2 + $0xb0] sm:$0xff] %v1327_v8  ;;  %v1330_v29 = vadd.f32 %v2028_v26, %v1169_v44  ;;  %v1917_v10 = vpop.f32.mrb[80].mxu1 }
 0x1fd   :  { %v2029_v12 = vpop.f32.mrb[80].mxu0  ;;  %v1918_v17 = vpop.f32.mrb[81].mxu1 }
 0x1fe   :  { %1388 = vst [vmem:[#allocation2 + $0xb8] sm:$0xff] %v1330_v29  ;;  %v1919_v2 = vadd.f32 %v1918_v17, %v1917_v10  ;;  %v2030_v54 = vpop.f32.mrb[81].mxu0  ;;  %v1920_v18 = vpop.f32.mrb[82].mxu1 }
 0x1ff   :  { %v2031_v19 = vadd.f32 %v2030_v54, %v2029_v12  ;;  %v2032_v30 = vpop.f32.mrb[82].mxu0  ;;  %v1921_v24 = vpop.f32.mrb[83].mxu1 }
 0x200   :  { %v1174_v42 = vadd.f32 %v1919_v2, %v2863_v61  ;;  %v1922_v39 = vadd.f32 %v1921_v24, %v1920_v18  ;;  %v2033_v27 = vpop.f32.mrb[83].mxu0 }
 0x201   :  { %v2034_v32 = vadd.f32 %v2033_v27, %v2032_v30 }
 0x202   :  { %v1335_v33 = vadd.f32 %v2031_v19, %v1174_v42  ;;  %v1177_v55 = vadd.f32 %v1922_v39, %v2867_v49 }
 0x204   :  { %1389 = vst [vmem:[#allocation2 + $0xc0] sm:$0xff] %v1335_v33  ;;  %v1338_v38 = vadd.f32 %v2034_v32, %v1177_v55  ;;  %v1923_v45 = vpop.f32.mrb[84].mxu1 }
 0x205   :  { %v2035_v9 = vpop.f32.mrb[84].mxu0  ;;  %v1924_v22 = vpop.f32.mrb[85].mxu1 }
 0x206   :  { %1390 = vst [vmem:[#allocation2 + $0xc8] sm:$0xff] %v1338_v38  ;;  %v1925_v11 = vadd.f32 %v1924_v22, %v1923_v45  ;;  %v2036_v40 = vpop.f32.mrb[85].mxu0  ;;  %v1926_v41 = vpop.f32.mrb[86].mxu1 }
 0x207   :  { %v2037_v15 = vadd.f32 %v2036_v40, %v2035_v9  ;;  %v2038_v43 = vpop.f32.mrb[86].mxu0  ;;  %v1927_v14 = vpop.f32.mrb[87].mxu1 }
 0x208   :  { %v1182_v61 = vadd.f32 %v1925_v11, %v2871_v6  ;;  %v1928_v47 = vadd.f32 %v1927_v14, %v1926_v41  ;;  %v2039_v16 = vpop.f32.mrb[87].mxu0 }
 0x209   :  { %v2040_v48 = vadd.f32 %v2039_v16, %v2038_v43 }
 0x20a   :  { %v1343_v50 = vadd.f32 %v2037_v15, %v1182_v61  ;;  %v1185_v49 = vadd.f32 %v1928_v47, %v2875_v13 }
 0x20c   :  { %1391 = vst [vmem:[#allocation2 + $0xd0] sm:$0xff] %v1343_v50  ;;  %v1346_v52 = vadd.f32 %v2040_v48, %v1185_v49  ;;  %v1929_v57 = vpop.f32.mrb[88].mxu1 }
 0x20d   :  { %v2041_v51 = vpop.f32.mrb[88].mxu0  ;;  %v1930_v58 = vpop.f32.mrb[89].mxu1 }
 0x20e   :  { %1392 = vst [vmem:[#allocation2 + $0xd8] sm:$0xff] %v1346_v52  ;;  %v1931_v20 = vadd.f32 %v1930_v58, %v1929_v57  ;;  %v2042_v59 = vpop.f32.mrb[89].mxu0  ;;  %v1932_v60 = vpop.f32.mrb[90].mxu1 }
 0x20f   :  { %v2043_v25 = vadd.f32 %v2042_v59, %v2041_v51  ;;  %v2044_v62 = vpop.f32.mrb[90].mxu0  ;;  %v1933_v28 = vpop.f32.mrb[91].mxu1 }
 0x210   :  { %v1190_v6 = vadd.f32 %v1931_v20, %v2879_v21  ;;  %v1934_v56 = vadd.f32 %v1933_v28, %v1932_v60  ;;  %v2045_v0 = vpop.f32.mrb[91].mxu0 }
 0x211   :  { %v2046_v35 = vadd.f32 %v2045_v0, %v2044_v62 }
 0x212   :  { %v1351_v36 = vadd.f32 %v2043_v25, %v1190_v6  ;;  %v1193_v13 = vadd.f32 %v1934_v56, %v2883_v34 }
 0x214   :  { %1393 = vst [vmem:[#allocation2 + $0xe0] sm:$0xff] %v1351_v36  ;;  %v1354_v23 = vadd.f32 %v2046_v35, %v1193_v13  ;;  %v1935_v1 = vpop.f32.mrb[92].mxu1 }
 0x215   :  { %v2047_v63 = vpop.f32.mrb[92].mxu0  ;;  %v1936_v3 = vpop.f32.mrb[93].mxu1 }
 0x216   :  { %1394 = vst [vmem:[#allocation2 + $0xe8] sm:$0xff] %v1354_v23  ;;  %v1937_v4 = vadd.f32 %v1936_v3, %v1935_v1  ;;  %v2048_v31 = vpop.f32.mrb[93].mxu0  ;;  %v1938_v37 = vpop.f32.mrb[94].mxu1 }
 0x217   :  { %v2049_v5 = vadd.f32 %v2048_v31, %v2047_v63  ;;  %v2050_v7 = vpop.f32.mrb[94].mxu0  ;;  %v1939_v26 = vpop.f32.mrb[95].mxu1 }
 0x218   :  { %v1198_v21 = vadd.f32 %v1937_v4, %v2887_v46  ;;  %v1940_v8 = vadd.f32 %v1939_v26, %v1938_v37  ;;  %v2051_v44 = vpop.f32.mrb[95].mxu0 }
 0x219   :  { %v2052_v29 = vadd.f32 %v2051_v44, %v2050_v7 }
 0x21a   :  { %v1359_v34 = vadd.f32 %v2049_v5, %v1198_v21  ;;  %v1201_v10 = vadd.f32 %v1940_v8, %v2891_v53 }
 0x21c   :  { %1395 = vst [vmem:[#allocation2 + $0xf0] sm:$0xff] %v1359_v34  ;;  %v1362_v12 = vadd.f32 %v2052_v29, %v1201_v10 }
 0x21e   :  { %1396 = vst [vmem:[#allocation2 + $0xf8] sm:$0xff] %v1362_v12 }
 0x21f   :  { %2135 = shalt.err (!%p2132_p4)
}
 0x220   :  { %s2136_s16 = scalar_lea.hbm %s2942_s3, 4096 }
 0x221   :  { %p2137_p5 = scmp.ne.s32.totalorder %s2942_s3, %s2136_s16  ;;  %p2140_p6 = scmp.lt.u32.totalorder %s2136_s16, %s2942_s3 }
 0x223   :  { %p2142_p7 = pnand %p2140_p6, %p2137_p5 }
 0x225   :  { %2145 = shalt.err (!%p2142_p7)
}
 0x226   :  { %s2151_s21 = smov 128   ;;  %s2152_s22 = smov 8  }
 0x227   :  { %1408 = dma.vmem_to_hbm [thread:$0]  %s1403_s1, 4096, %s2942_s3, [#allocation3], %s2151_s21, %s2151_s21, %s2152_s22  }
 0x228   :  { %2146 = dma.done.wait [#allocation3], 4096  }
 0x229   :  { %2147 = vsyncadd [#allocation3], 4294963200 }
 0x22a   :  { %1412 = vsyncpa [#allocation3], 1 }

</bundles_post_ra>
